<compile_context>
chip_gen: v6e
topology: v6e:2x2x1
jax: 0.10.0
libtpu: 0.0.40
codegen_flags: <defaults>
</compile_context>

<pallas_src>
import math
import functools

import jax
import jax.numpy as jnp
from jax.experimental import pallas as pl
from jax.experimental.pallas import tpu as pltpu


def _encoder_layer_kernel(n_heads, d_head, compute_dtype,
                          x_ref,
                          wq_ref, wk_ref, wv_ref, wo_ref,
                          g1_ref, be1_ref, g2_ref, be2_ref,
                          w1_ref, fb1_ref, w2_ref, fb2_ref,
                          o_ref,
                          qh_ref, kh_ref, vh_ref):
    # x_ref block: (L, D) (batch dim squeezed away by BlockSpec); one batch element per grid step.
    L, D = x_ref.shape
    x = x_ref[...]                                   # (L, D) f32

    def layernorm(h, gamma, beta):
        mu = jnp.mean(h, axis=-1, keepdims=True)
        d = h - mu
        var = jnp.mean(d * d, axis=-1, keepdims=True)
        return d * jax.lax.rsqrt(var + 1e-5) * gamma + beta

    def softmax_last(s):
        m = jnp.max(s, axis=-1, keepdims=True)
        e = jnp.exp(s - m)
        # divide -> multiply by EUP reciprocal (frees the VALU slot)
        return e * pl.reciprocal(jnp.sum(e, axis=-1, keepdims=True), approx=True)

    # ---- LN1 + multi-head self-attention ----
    h1 = layernorm(x, g1_ref[0], be1_ref[0])         # (L, D) f32
    h1c = h1.astype(compute_dtype)                   # bf16 MXU operand
    scale = 1.0 / math.sqrt(d_head)

    # Per-head projections: each is a clean (L, D) @ (D, dh) matmul written to a leading-index
    # slice of the (H, L, dh) scratch — no lane-dim slicing, nothing big stays live per head.
    for h in range(n_heads):                         # static, small
        qh_ref[h] = (jnp.dot(h1c, wq_ref[h], preferred_element_type=jnp.float32)
                     * scale).astype(compute_dtype)
        kh_ref[h] = jnp.dot(h1c, wk_ref[h],
                            preferred_element_type=jnp.float32).astype(compute_dtype)
        vh_ref[h] = jnp.dot(h1c, wv_ref[h],
                            preferred_element_type=jnp.float32).astype(compute_dtype)

    # TODO(synk): optional additive attention `mask` of the PyTorch forward is not wired in
    #             (mask=None path only).
    scores = jnp.einsum('hqd,hkd->hqk', qh_ref[...], kh_ref[...],
                        preferred_element_type=jnp.float32)          # (H, L, L) f32
    attn = softmax_last(scores)
    ctx = jnp.einsum('hqk,hkd->hqd', attn.astype(compute_dtype), vh_ref[...],
                     preferred_element_type=jnp.float32)             # (H, L, dh) f32

    # Output projection: accumulate per head with the per-head (dh, D) weight slab.
    # Equivalent to concat(ctx_heads) @ Wo^T, but with no lane-dim concat/relayout.
    attn_out = jnp.zeros((L, D), jnp.float32)
    for h in range(n_heads):
        attn_out = attn_out + jnp.dot(ctx[h].astype(compute_dtype), wo_ref[h],
                                      preferred_element_type=jnp.float32)

    x1 = x + attn_out                                # residual 1 (f32)

    # ---- LN2 + FFN (Linear -> Softmax(dim=-1) -> Linear) ----
    h2 = layernorm(x1, g2_ref[0], be2_ref[0])
    hid = jnp.dot(h2.astype(compute_dtype), w1_ref[...],
                  preferred_element_type=jnp.float32) + fb1_ref[0]   # (L, ff) f32
    hid = softmax_last(hid)
    ffn_out = jnp.dot(hid.astype(compute_dtype), w2_ref[...],
                      preferred_element_type=jnp.float32) + fb2_ref[0]  # (L, D) f32

    o_ref[...] = (x1 + ffn_out).astype(o_ref.dtype)  # residual 2


def icssl_encoder_layer(x, kparams, n_heads, *, compute_dtype=jnp.bfloat16):
    """x: (B, L, D) float32.  kparams: kernel-layout params (see pack_kernel_params)."""
    B, L, D = x.shape
    H = n_heads
    dh = D // H
    ff = kparams["w1_t"].shape[1]

    kernel = functools.partial(_encoder_layer_kernel, H, dh, compute_dtype)

    def const2(shape):
        return pl.BlockSpec(shape, lambda b: (0, 0))

    def const3(shape):
        return pl.BlockSpec(shape, lambda b: (0, 0, 0))

    grid_spec = pltpu.PrefetchScalarGridSpec(
        num_scalar_prefetch=0,
        grid=(B,),
        in_specs=[
            pl.BlockSpec((pl.Squeezed(), L, D), lambda b: (b, 0, 0)),  # x -> kernel sees (L, D)
            const3((H, D, dh)),                                        # Wq per head
            const3((H, D, dh)),                                        # Wk per head
            const3((H, D, dh)),                                        # Wv per head
            const3((H, dh, D)),                                        # Wo per head
            const2((1, D)),                                            # ln1 gamma
            const2((1, D)),                                            # ln1 beta
            const2((1, D)),                                            # ln2 gamma
            const2((1, D)),                                            # ln2 beta
            const2((D, ff)),                                           # W1^T
            const2((1, ff)),                                           # b1
            const2((ff, D)),                                           # W2^T
            const2((1, D)),                                            # b2
        ],
        out_specs=pl.BlockSpec((pl.Squeezed(), L, D), lambda b: (b, 0, 0)),
        scratch_shapes=[
            pltpu.VMEM((H, L, dh), compute_dtype),   # q heads
            pltpu.VMEM((H, L, dh), compute_dtype),   # k heads
            pltpu.VMEM((H, L, dh), compute_dtype),   # v heads
        ],
    )

    return pl.pallas_call(
        kernel,
        out_shape=jax.ShapeDtypeStruct((B, L, D), x.dtype),
        grid_spec=grid_spec,
        compiler_params=pltpu.CompilerParams(
            dimension_semantics=("parallel",),
            vmem_limit_bytes=32 * 1024 * 1024,
        ),
    )(x,
      kparams["wq_h"], kparams["wk_h"], kparams["wv_h"], kparams["wo_h"],
      kparams["g1"], kparams["be1"], kparams["g2"], kparams["be2"],
      kparams["w1_t"], kparams["fb1"], kparams["w2_t"], kparams["fb2"])


def init_params(key, d_model, ff_mult):
    """f32 'math' parameters matching the PyTorch module (weights pre-transposed to (in, out))."""
    ff = ff_mult * d_model
    ks = jax.random.split(key, 8)
    s = 0.02
    return {
        "wq_t": s * jax.random.normal(ks[0], (d_model, d_model), jnp.float32),
        "wk_t": s * jax.random.normal(ks[1], (d_model, d_model), jnp.float32),
        "wv_t": s * jax.random.normal(ks[2], (d_model, d_model), jnp.float32),
        "wo_t": s * jax.random.normal(ks[3], (d_model, d_model), jnp.float32),
        "g1": jnp.ones((1, d_model), jnp.float32),
        "be1": jnp.zeros((1, d_model), jnp.float32),
        "g2": jnp.ones((1, d_model), jnp.float32),
        "be2": jnp.zeros((1, d_model), jnp.float32),
        "w1_t": s * jax.random.normal(ks[4], (d_model, ff), jnp.float32),
        "fb1": s * jax.random.normal(ks[5], (1, ff), jnp.float32),
        "w2_t": s * jax.random.normal(ks[6], (ff, d_model), jnp.float32),
        "fb2": s * jax.random.normal(ks[7], (1, d_model), jnp.float32),
    }


def pack_kernel_params(p, n_heads, compute_dtype=jnp.bfloat16):
    """Repack f32 math params into the kernel layout: per-head bf16 projection slabs."""
    D = p["wq_t"].shape[0]
    dh = D // n_heads

    def per_head_in(w):  # (D, D) -> (H, D, dh): head h column block becomes slab h
        return jnp.transpose(w.reshape(D, n_heads, dh), (1, 0, 2)).astype(compute_dtype)

    return {
        "wq_h": per_head_in(p["wq_t"]),
        "wk_h": per_head_in(p["wk_t"]),
        "wv_h": per_head_in(p["wv_t"]),
        "wo_h": p["wo_t"].reshape(n_heads, dh, D).astype(compute_dtype),  # (H, dh, D)
        "g1": p["g1"], "be1": p["be1"], "g2": p["g2"], "be2": p["be2"],
        "w1_t": p["w1_t"].astype(compute_dtype), "fb1": p["fb1"],
        "w2_t": p["w2_t"].astype(compute_dtype), "fb2": p["fb2"],
    }


def reference_forward(x, p, n_heads):
    """Pure-JAX f32 reference replicating the PyTorch module semantics."""
    B, L, D = x.shape
    d_head = D // n_heads

    def ln(h, g, b):
        mu = jnp.mean(h, axis=-1, keepdims=True)
        var = jnp.mean((h - mu) ** 2, axis=-1, keepdims=True)
        return (h - mu) / jnp.sqrt(var + 1e-5) * g + b

    h1 = ln(x, p["g1"][0], p["be1"][0])
    q = (h1 @ p["wq_t"]).reshape(B, L, n_heads, d_head).transpose(0, 2, 1, 3)
    k = (h1 @ p["wk_t"]).reshape(B, L, n_heads, d_head).transpose(0, 2, 1, 3)
    v = (h1 @ p["wv_t"]).reshape(B, L, n_heads, d_head).transpose(0, 2, 1, 3)
    scores = jnp.einsum("bhqd,bhkd->bhqk", q, k) / math.sqrt(d_head)
    attn = jax.nn.softmax(scores, axis=-1)
    ctx = jnp.einsum("bhqk,bhkd->bhqd", attn, v).transpose(0, 2, 1, 3).reshape(B, L, D)
    x1 = x + ctx @ p["wo_t"]
    h2 = ln(x1, p["g2"][0], p["be2"][0])
    hid = jax.nn.softmax(h2 @ p["w1_t"] + p["fb1"][0], axis=-1)
    return x1 + hid @ p["w2_t"] + p["fb2"][0]


if __name__ == "__main__":
    B, L, D, n_heads, ff_mult = 2, 8, 32, 4, 4
    key = jax.random.PRNGKey(0)
    kx, kp = jax.random.split(key)
    x = jax.random.normal(kx, (B, L, D), jnp.float32)
    params = init_params(kp, D, ff_mult)
    kparams = pack_kernel_params(params, n_heads)

    out = jax.block_until_ready(icssl_encoder_layer(x, kparams, n_heads))

    ref = reference_forward(x, params, n_heads)
    assert out.shape == (B, L, D)
    err = float(jnp.max(jnp.abs(out - ref)))
    # bf16 MXU operands + approx reciprocal vs. pure-f32 reference -> loosened tolerance.
    assert jnp.allclose(out, ref, atol=2e-2, rtol=2e-2), err
    print("KERNEL_OK")
</pallas_src>

<mosaic_0001>
module attributes {stable_mosaic.version = 11 : i64} {
  func.func @_encoder_layer_kernel(%arg0: i32, %arg1: memref<1x8x32xf32, #tpu.memory_space<vmem>>, %arg2: memref<4x32x8xbf16, #tpu.memory_space<vmem>>, %arg3: memref<4x32x8xbf16, #tpu.memory_space<vmem>>, %arg4: memref<4x32x8xbf16, #tpu.memory_space<vmem>>, %arg5: memref<4x8x32xbf16, #tpu.memory_space<vmem>>, %arg6: memref<1x32xf32, #tpu.memory_space<vmem>>, %arg7: memref<1x32xf32, #tpu.memory_space<vmem>>, %arg8: memref<1x32xf32, #tpu.memory_space<vmem>>, %arg9: memref<1x32xf32, #tpu.memory_space<vmem>>, %arg10: memref<32x128xbf16, #tpu.memory_space<vmem>>, %arg11: memref<1x128xf32, #tpu.memory_space<vmem>>, %arg12: memref<128x32xbf16, #tpu.memory_space<vmem>>, %arg13: memref<1x32xf32, #tpu.memory_space<vmem>>, %arg14: memref<1x8x32xf32, #tpu.memory_space<vmem>>, %arg15: memref<4x8x8xbf16, #tpu.memory_space<vmem>>, %arg16: memref<4x8x8xbf16, #tpu.memory_space<vmem>>, %arg17: memref<4x8x8xbf16, #tpu.memory_space<vmem>>) attributes {dimension_semantics = [#tpu.dimension_semantics<parallel>], iteration_bounds = array<i64: 2>, scalar_prefetch = 0 : i64, scratch_operands = 3 : i64, tpu.core_type = #tpu.core_type<tc>, window_params = [{transform_indices = @transform_0, window_bounds = array<i64: 1, 8, 32>}, {pipeline_mode = #tpu.pipeline_mode<synchronous>, transform_indices = @transform_1, window_bounds = array<i64: 4, 32, 8>}, {pipeline_mode = #tpu.pipeline_mode<synchronous>, transform_indices = @transform_2, window_bounds = array<i64: 4, 32, 8>}, {pipeline_mode = #tpu.pipeline_mode<synchronous>, transform_indices = @transform_3, window_bounds = array<i64: 4, 32, 8>}, {pipeline_mode = #tpu.pipeline_mode<synchronous>, transform_indices = @transform_4, window_bounds = array<i64: 4, 8, 32>}, {pipeline_mode = #tpu.pipeline_mode<synchronous>, transform_indices = @transform_5, window_bounds = array<i64: 1, 32>}, {pipeline_mode = #tpu.pipeline_mode<synchronous>, transform_indices = @transform_6, window_bounds = array<i64: 1, 32>}, {pipeline_mode = #tpu.pipeline_mode<synchronous>, transform_indices = @transform_7, window_bounds = array<i64: 1, 32>}, {pipeline_mode = #tpu.pipeline_mode<synchronous>, transform_indices = @transform_8, window_bounds = array<i64: 1, 32>}, {pipeline_mode = #tpu.pipeline_mode<synchronous>, transform_indices = @transform_9, window_bounds = array<i64: 32, 128>}, {pipeline_mode = #tpu.pipeline_mode<synchronous>, transform_indices = @transform_10, window_bounds = array<i64: 1, 128>}, {pipeline_mode = #tpu.pipeline_mode<synchronous>, transform_indices = @transform_11, window_bounds = array<i64: 128, 32>}, {pipeline_mode = #tpu.pipeline_mode<synchronous>, transform_indices = @transform_12, window_bounds = array<i64: 1, 32>}, {transform_indices = @transform_13, window_bounds = array<i64: 1, 8, 32>}]} {
    %c0 = arith.constant 0 : index
    %c0_0 = arith.constant 0 : index
    %c0_1 = arith.constant 0 : index
    %0 = vector.load %arg1[%c0, %c0_0, %c0_1] : memref<1x8x32xf32, #tpu.memory_space<vmem>>, vector<1x8x32xf32>
    %1 = vector.shape_cast %0 : vector<1x8x32xf32> to vector<8x32xf32>
    %c0_2 = arith.constant 0 : index
    %c0_3 = arith.constant 0 : index
    %2 = vector.load %arg6[%c0_2, %c0_3] : memref<1x32xf32, #tpu.memory_space<vmem>>, vector<1x32xf32>
    %3 = vector.shape_cast %2 : vector<1x32xf32> to vector<32xf32>
    %c0_4 = arith.constant 0 : index
    %c0_5 = arith.constant 0 : index
    %4 = vector.load %arg7[%c0_4, %c0_5] : memref<1x32xf32, #tpu.memory_space<vmem>>, vector<1x32xf32>
    %5 = vector.shape_cast %4 : vector<1x32xf32> to vector<32xf32>
    %cst = arith.constant dense<0.000000e+00> : vector<8xf32>
    %6 = vector.multi_reduction <add>, %1, %cst [1] : vector<8x32xf32> to vector<8xf32>
    %7 = vector.shape_cast %6 : vector<8xf32> to vector<8x1xf32>
    %cst_6 = arith.constant 3.200000e+01 : f32
    %8 = vector.broadcast %cst_6 : f32 to vector<8x1xf32>
    %9 = arith.divf %7, %8 : vector<8x1xf32>
    %10 = vector.broadcast %9 : vector<8x1xf32> to vector<8x32xf32>
    %11 = arith.subf %1, %10 : vector<8x32xf32>
    %12 = arith.mulf %11, %11 : vector<8x32xf32>
    %cst_7 = arith.constant dense<0.000000e+00> : vector<8xf32>
    %13 = vector.multi_reduction <add>, %12, %cst_7 [1] : vector<8x32xf32> to vector<8xf32>
    %14 = vector.shape_cast %13 : vector<8xf32> to vector<8x1xf32>
    %cst_8 = arith.constant 3.200000e+01 : f32
    %15 = vector.broadcast %cst_8 : f32 to vector<8x1xf32>
    %16 = arith.divf %14, %15 : vector<8x1xf32>
    %cst_9 = arith.constant 9.99999974E-6 : f32
    %17 = vector.broadcast %cst_9 : f32 to vector<8x1xf32>
    %18 = arith.addf %16, %17 : vector<8x1xf32>
    %19 = math.rsqrt %18 : vector<8x1xf32>
    %20 = vector.broadcast %19 : vector<8x1xf32> to vector<8x32xf32>
    %21 = arith.mulf %11, %20 : vector<8x32xf32>
    %22 = vector.shape_cast %3 : vector<32xf32> to vector<1x32xf32>
    %23 = vector.broadcast %22 : vector<1x32xf32> to vector<8x32xf32>
    %24 = arith.mulf %21, %23 : vector<8x32xf32>
    %25 = vector.shape_cast %5 : vector<32xf32> to vector<1x32xf32>
    %26 = vector.broadcast %25 : vector<1x32xf32> to vector<8x32xf32>
    %27 = arith.addf %24, %26 : vector<8x32xf32>
    %28 = arith.truncf %27 : vector<8x32xf32> to vector<8x32xbf16>
    %c0_10 = arith.constant 0 : index
    %c0_11 = arith.constant 0 : index
    %c0_12 = arith.constant 0 : index
    %29 = vector.load %arg2[%c0_10, %c0_11, %c0_12] : memref<4x32x8xbf16, #tpu.memory_space<vmem>>, vector<1x32x8xbf16>
    %30 = vector.shape_cast %29 : vector<1x32x8xbf16> to vector<32x8xbf16>
    %cst_13 = arith.constant dense<0.000000e+00> : vector<8x8xf32>
    %31 = tpu.matmul %28, %30, %cst_13 {dimension_numbers = #tpu.dot_dimension_numbers<[1], [0], [0], [1], [0, 0, 1, 1], [], []>} : vector<8x32xbf16>, vector<32x8xbf16>, vector<8x8xf32> -> vector<8x8xf32>
    %cst_14 = arith.constant 0.353553385 : f32
    %32 = vector.broadcast %cst_14 : f32 to vector<8x8xf32>
    %33 = arith.mulf %31, %32 : vector<8x8xf32>
    %34 = arith.truncf %33 : vector<8x8xf32> to vector<8x8xbf16>
    %c0_15 = arith.constant 0 : index
    %c0_16 = arith.constant 0 : index
    %c0_17 = arith.constant 0 : index
    %35 = vector.load %arg15[%c0_15, %c0_16, %c0_17] : memref<4x8x8xbf16, #tpu.memory_space<vmem>>, vector<1x8x8xbf16>
    %36 = vector.shape_cast %35 : vector<1x8x8xbf16> to vector<8x8xbf16>
    %37 = vector.shape_cast %34 : vector<8x8xbf16> to vector<1x8x8xbf16>
    tpu.vector_store %arg15[%c0_15, %c0_16, %c0_17], %37 {strides = array<i32>} : memref<4x8x8xbf16, #tpu.memory_space<vmem>>, vector<1x8x8xbf16>,
    %c0_18 = arith.constant 0 : index
    %c0_19 = arith.constant 0 : index
    %c0_20 = arith.constant 0 : index
    %38 = vector.load %arg3[%c0_18, %c0_19, %c0_20] : memref<4x32x8xbf16, #tpu.memory_space<vmem>>, vector<1x32x8xbf16>
    %39 = vector.shape_cast %38 : vector<1x32x8xbf16> to vector<32x8xbf16>
    %cst_21 = arith.constant dense<0.000000e+00> : vector<8x8xf32>
    %40 = tpu.matmul %28, %39, %cst_21 {dimension_numbers = #tpu.dot_dimension_numbers<[1], [0], [0], [1], [0, 0, 1, 1], [], []>} : vector<8x32xbf16>, vector<32x8xbf16>, vector<8x8xf32> -> vector<8x8xf32>
    %41 = arith.truncf %40 : vector<8x8xf32> to vector<8x8xbf16>
    %c0_22 = arith.constant 0 : index
    %c0_23 = arith.constant 0 : index
    %c0_24 = arith.constant 0 : index
    %42 = vector.load %arg16[%c0_22, %c0_23, %c0_24] : memref<4x8x8xbf16, #tpu.memory_space<vmem>>, vector<1x8x8xbf16>
    %43 = vector.shape_cast %42 : vector<1x8x8xbf16> to vector<8x8xbf16>
    %44 = vector.shape_cast %41 : vector<8x8xbf16> to vector<1x8x8xbf16>
    tpu.vector_store %arg16[%c0_22, %c0_23, %c0_24], %44 {strides = array<i32>} : memref<4x8x8xbf16, #tpu.memory_space<vmem>>, vector<1x8x8xbf16>,
    %c0_25 = arith.constant 0 : index
    %c0_26 = arith.constant 0 : index
    %c0_27 = arith.constant 0 : index
    %45 = vector.load %arg4[%c0_25, %c0_26, %c0_27] : memref<4x32x8xbf16, #tpu.memory_space<vmem>>, vector<1x32x8xbf16>
    %46 = vector.shape_cast %45 : vector<1x32x8xbf16> to vector<32x8xbf16>
    %cst_28 = arith.constant dense<0.000000e+00> : vector<8x8xf32>
    %47 = tpu.matmul %28, %46, %cst_28 {dimension_numbers = #tpu.dot_dimension_numbers<[1], [0], [0], [1], [0, 0, 1, 1], [], []>} : vector<8x32xbf16>, vector<32x8xbf16>, vector<8x8xf32> -> vector<8x8xf32>
    %48 = arith.truncf %47 : vector<8x8xf32> to vector<8x8xbf16>
    %c0_29 = arith.constant 0 : index
    %c0_30 = arith.constant 0 : index
    %c0_31 = arith.constant 0 : index
    %49 = vector.load %arg17[%c0_29, %c0_30, %c0_31] : memref<4x8x8xbf16, #tpu.memory_space<vmem>>, vector<1x8x8xbf16>
    %50 = vector.shape_cast %49 : vector<1x8x8xbf16> to vector<8x8xbf16>
    %51 = vector.shape_cast %48 : vector<8x8xbf16> to vector<1x8x8xbf16>
    tpu.vector_store %arg17[%c0_29, %c0_30, %c0_31], %51 {strides = array<i32>} : memref<4x8x8xbf16, #tpu.memory_space<vmem>>, vector<1x8x8xbf16>,
    %c1 = arith.constant 1 : index
    %c0_32 = arith.constant 0 : index
    %c0_33 = arith.constant 0 : index
    %52 = vector.load %arg2[%c1, %c0_32, %c0_33] : memref<4x32x8xbf16, #tpu.memory_space<vmem>>, vector<1x32x8xbf16>
    %53 = vector.shape_cast %52 : vector<1x32x8xbf16> to vector<32x8xbf16>
    %cst_34 = arith.constant dense<0.000000e+00> : vector<8x8xf32>
    %54 = tpu.matmul %28, %53, %cst_34 {dimension_numbers = #tpu.dot_dimension_numbers<[1], [0], [0], [1], [0, 0, 1, 1], [], []>} : vector<8x32xbf16>, vector<32x8xbf16>, vector<8x8xf32> -> vector<8x8xf32>
    %cst_35 = arith.constant 0.353553385 : f32
    %55 = vector.broadcast %cst_35 : f32 to vector<8x8xf32>
    %56 = arith.mulf %54, %55 : vector<8x8xf32>
    %57 = arith.truncf %56 : vector<8x8xf32> to vector<8x8xbf16>
    %c1_36 = arith.constant 1 : index
    %c0_37 = arith.constant 0 : index
    %c0_38 = arith.constant 0 : index
    %58 = vector.load %arg15[%c1_36, %c0_37, %c0_38] : memref<4x8x8xbf16, #tpu.memory_space<vmem>>, vector<1x8x8xbf16>
    %59 = vector.shape_cast %58 : vector<1x8x8xbf16> to vector<8x8xbf16>
    %60 = vector.shape_cast %57 : vector<8x8xbf16> to vector<1x8x8xbf16>
    tpu.vector_store %arg15[%c1_36, %c0_37, %c0_38], %60 {strides = array<i32>} : memref<4x8x8xbf16, #tpu.memory_space<vmem>>, vector<1x8x8xbf16>,
    %c1_39 = arith.constant 1 : index
    %c0_40 = arith.constant 0 : index
    %c0_41 = arith.constant 0 : index
    %61 = vector.load %arg3[%c1_39, %c0_40, %c0_41] : memref<4x32x8xbf16, #tpu.memory_space<vmem>>, vector<1x32x8xbf16>
    %62 = vector.shape_cast %61 : vector<1x32x8xbf16> to vector<32x8xbf16>
    %cst_42 = arith.constant dense<0.000000e+00> : vector<8x8xf32>
    %63 = tpu.matmul %28, %62, %cst_42 {dimension_numbers = #tpu.dot_dimension_numbers<[1], [0], [0], [1], [0, 0, 1, 1], [], []>} : vector<8x32xbf16>, vector<32x8xbf16>, vector<8x8xf32> -> vector<8x8xf32>
    %64 = arith.truncf %63 : vector<8x8xf32> to vector<8x8xbf16>
    %c1_43 = arith.constant 1 : index
    %c0_44 = arith.constant 0 : index
    %c0_45 = arith.constant 0 : index
    %65 = vector.load %arg16[%c1_43, %c0_44, %c0_45] : memref<4x8x8xbf16, #tpu.memory_space<vmem>>, vector<1x8x8xbf16>
    %66 = vector.shape_cast %65 : vector<1x8x8xbf16> to vector<8x8xbf16>
    %67 = vector.shape_cast %64 : vector<8x8xbf16> to vector<1x8x8xbf16>
    tpu.vector_store %arg16[%c1_43, %c0_44, %c0_45], %67 {strides = array<i32>} : memref<4x8x8xbf16, #tpu.memory_space<vmem>>, vector<1x8x8xbf16>,
    %c1_46 = arith.constant 1 : index
    %c0_47 = arith.constant 0 : index
    %c0_48 = arith.constant 0 : index
    %68 = vector.load %arg4[%c1_46, %c0_47, %c0_48] : memref<4x32x8xbf16, #tpu.memory_space<vmem>>, vector<1x32x8xbf16>
    %69 = vector.shape_cast %68 : vector<1x32x8xbf16> to vector<32x8xbf16>
    %cst_49 = arith.constant dense<0.000000e+00> : vector<8x8xf32>
    %70 = tpu.matmul %28, %69, %cst_49 {dimension_numbers = #tpu.dot_dimension_numbers<[1], [0], [0], [1], [0, 0, 1, 1], [], []>} : vector<8x32xbf16>, vector<32x8xbf16>, vector<8x8xf32> -> vector<8x8xf32>
    %71 = arith.truncf %70 : vector<8x8xf32> to vector<8x8xbf16>
    %c1_50 = arith.constant 1 : index
    %c0_51 = arith.constant 0 : index
    %c0_52 = arith.constant 0 : index
    %72 = vector.load %arg17[%c1_50, %c0_51, %c0_52] : memref<4x8x8xbf16, #tpu.memory_space<vmem>>, vector<1x8x8xbf16>
    %73 = vector.shape_cast %72 : vector<1x8x8xbf16> to vector<8x8xbf16>
    %74 = vector.shape_cast %71 : vector<8x8xbf16> to vector<1x8x8xbf16>
    tpu.vector_store %arg17[%c1_50, %c0_51, %c0_52], %74 {strides = array<i32>} : memref<4x8x8xbf16, #tpu.memory_space<vmem>>, vector<1x8x8xbf16>,
    %c2 = arith.constant 2 : index
    %c0_53 = arith.constant 0 : index
    %c0_54 = arith.constant 0 : index
    %75 = vector.load %arg2[%c2, %c0_53, %c0_54] : memref<4x32x8xbf16, #tpu.memory_space<vmem>>, vector<1x32x8xbf16>
    %76 = vector.shape_cast %75 : vector<1x32x8xbf16> to vector<32x8xbf16>
    %cst_55 = arith.constant dense<0.000000e+00> : vector<8x8xf32>
    %77 = tpu.matmul %28, %76, %cst_55 {dimension_numbers = #tpu.dot_dimension_numbers<[1], [0], [0], [1], [0, 0, 1, 1], [], []>} : vector<8x32xbf16>, vector<32x8xbf16>, vector<8x8xf32> -> vector<8x8xf32>
    %cst_56 = arith.constant 0.353553385 : f32
    %78 = vector.broadcast %cst_56 : f32 to vector<8x8xf32>
    %79 = arith.mulf %77, %78 : vector<8x8xf32>
    %80 = arith.truncf %79 : vector<8x8xf32> to vector<8x8xbf16>
    %c2_57 = arith.constant 2 : index
    %c0_58 = arith.constant 0 : index
    %c0_59 = arith.constant 0 : index
    %81 = vector.load %arg15[%c2_57, %c0_58, %c0_59] : memref<4x8x8xbf16, #tpu.memory_space<vmem>>, vector<1x8x8xbf16>
    %82 = vector.shape_cast %81 : vector<1x8x8xbf16> to vector<8x8xbf16>
    %83 = vector.shape_cast %80 : vector<8x8xbf16> to vector<1x8x8xbf16>
    tpu.vector_store %arg15[%c2_57, %c0_58, %c0_59], %83 {strides = array<i32>} : memref<4x8x8xbf16, #tpu.memory_space<vmem>>, vector<1x8x8xbf16>,
    %c2_60 = arith.constant 2 : index
    %c0_61 = arith.constant 0 : index
    %c0_62 = arith.constant 0 : index
    %84 = vector.load %arg3[%c2_60, %c0_61, %c0_62] : memref<4x32x8xbf16, #tpu.memory_space<vmem>>, vector<1x32x8xbf16>
    %85 = vector.shape_cast %84 : vector<1x32x8xbf16> to vector<32x8xbf16>
    %cst_63 = arith.constant dense<0.000000e+00> : vector<8x8xf32>
    %86 = tpu.matmul %28, %85, %cst_63 {dimension_numbers = #tpu.dot_dimension_numbers<[1], [0], [0], [1], [0, 0, 1, 1], [], []>} : vector<8x32xbf16>, vector<32x8xbf16>, vector<8x8xf32> -> vector<8x8xf32>
    %87 = arith.truncf %86 : vector<8x8xf32> to vector<8x8xbf16>
    %c2_64 = arith.constant 2 : index
    %c0_65 = arith.constant 0 : index
    %c0_66 = arith.constant 0 : index
    %88 = vector.load %arg16[%c2_64, %c0_65, %c0_66] : memref<4x8x8xbf16, #tpu.memory_space<vmem>>, vector<1x8x8xbf16>
    %89 = vector.shape_cast %88 : vector<1x8x8xbf16> to vector<8x8xbf16>
    %90 = vector.shape_cast %87 : vector<8x8xbf16> to vector<1x8x8xbf16>
    tpu.vector_store %arg16[%c2_64, %c0_65, %c0_66], %90 {strides = array<i32>} : memref<4x8x8xbf16, #tpu.memory_space<vmem>>, vector<1x8x8xbf16>,
    %c2_67 = arith.constant 2 : index
    %c0_68 = arith.constant 0 : index
    %c0_69 = arith.constant 0 : index
    %91 = vector.load %arg4[%c2_67, %c0_68, %c0_69] : memref<4x32x8xbf16, #tpu.memory_space<vmem>>, vector<1x32x8xbf16>
    %92 = vector.shape_cast %91 : vector<1x32x8xbf16> to vector<32x8xbf16>
    %cst_70 = arith.constant dense<0.000000e+00> : vector<8x8xf32>
    %93 = tpu.matmul %28, %92, %cst_70 {dimension_numbers = #tpu.dot_dimension_numbers<[1], [0], [0], [1], [0, 0, 1, 1], [], []>} : vector<8x32xbf16>, vector<32x8xbf16>, vector<8x8xf32> -> vector<8x8xf32>
    %94 = arith.truncf %93 : vector<8x8xf32> to vector<8x8xbf16>
    %c2_71 = arith.constant 2 : index
    %c0_72 = arith.constant 0 : index
    %c0_73 = arith.constant 0 : index
    %95 = vector.load %arg17[%c2_71, %c0_72, %c0_73] : memref<4x8x8xbf16, #tpu.memory_space<vmem>>, vector<1x8x8xbf16>
    %96 = vector.shape_cast %95 : vector<1x8x8xbf16> to vector<8x8xbf16>
    %97 = vector.shape_cast %94 : vector<8x8xbf16> to vector<1x8x8xbf16>
    tpu.vector_store %arg17[%c2_71, %c0_72, %c0_73], %97 {strides = array<i32>} : memref<4x8x8xbf16, #tpu.memory_space<vmem>>, vector<1x8x8xbf16>,
    %c3 = arith.constant 3 : index
    %c0_74 = arith.constant 0 : index
    %c0_75 = arith.constant 0 : index
    %98 = vector.load %arg2[%c3, %c0_74, %c0_75] : memref<4x32x8xbf16, #tpu.memory_space<vmem>>, vector<1x32x8xbf16>
    %99 = vector.shape_cast %98 : vector<1x32x8xbf16> to vector<32x8xbf16>
    %cst_76 = arith.constant dense<0.000000e+00> : vector<8x8xf32>
    %100 = tpu.matmul %28, %99, %cst_76 {dimension_numbers = #tpu.dot_dimension_numbers<[1], [0], [0], [1], [0, 0, 1, 1], [], []>} : vector<8x32xbf16>, vector<32x8xbf16>, vector<8x8xf32> -> vector<8x8xf32>
    %cst_77 = arith.constant 0.353553385 : f32
    %101 = vector.broadcast %cst_77 : f32 to vector<8x8xf32>
    %102 = arith.mulf %100, %101 : vector<8x8xf32>
    %103 = arith.truncf %102 : vector<8x8xf32> to vector<8x8xbf16>
    %c3_78 = arith.constant 3 : index
    %c0_79 = arith.constant 0 : index
    %c0_80 = arith.constant 0 : index
    %104 = vector.load %arg15[%c3_78, %c0_79, %c0_80] : memref<4x8x8xbf16, #tpu.memory_space<vmem>>, vector<1x8x8xbf16>
    %105 = vector.shape_cast %104 : vector<1x8x8xbf16> to vector<8x8xbf16>
    %106 = vector.shape_cast %103 : vector<8x8xbf16> to vector<1x8x8xbf16>
    tpu.vector_store %arg15[%c3_78, %c0_79, %c0_80], %106 {strides = array<i32>} : memref<4x8x8xbf16, #tpu.memory_space<vmem>>, vector<1x8x8xbf16>,
    %c3_81 = arith.constant 3 : index
    %c0_82 = arith.constant 0 : index
    %c0_83 = arith.constant 0 : index
    %107 = vector.load %arg3[%c3_81, %c0_82, %c0_83] : memref<4x32x8xbf16, #tpu.memory_space<vmem>>, vector<1x32x8xbf16>
    %108 = vector.shape_cast %107 : vector<1x32x8xbf16> to vector<32x8xbf16>
    %cst_84 = arith.constant dense<0.000000e+00> : vector<8x8xf32>
    %109 = tpu.matmul %28, %108, %cst_84 {dimension_numbers = #tpu.dot_dimension_numbers<[1], [0], [0], [1], [0, 0, 1, 1], [], []>} : vector<8x32xbf16>, vector<32x8xbf16>, vector<8x8xf32> -> vector<8x8xf32>
    %110 = arith.truncf %109 : vector<8x8xf32> to vector<8x8xbf16>
    %c3_85 = arith.constant 3 : index
    %c0_86 = arith.constant 0 : index
    %c0_87 = arith.constant 0 : index
    %111 = vector.load %arg16[%c3_85, %c0_86, %c0_87] : memref<4x8x8xbf16, #tpu.memory_space<vmem>>, vector<1x8x8xbf16>
    %112 = vector.shape_cast %111 : vector<1x8x8xbf16> to vector<8x8xbf16>
    %113 = vector.shape_cast %110 : vector<8x8xbf16> to vector<1x8x8xbf16>
    tpu.vector_store %arg16[%c3_85, %c0_86, %c0_87], %113 {strides = array<i32>} : memref<4x8x8xbf16, #tpu.memory_space<vmem>>, vector<1x8x8xbf16>,
    %c3_88 = arith.constant 3 : index
    %c0_89 = arith.constant 0 : index
    %c0_90 = arith.constant 0 : index
    %114 = vector.load %arg4[%c3_88, %c0_89, %c0_90] : memref<4x32x8xbf16, #tpu.memory_space<vmem>>, vector<1x32x8xbf16>
    %115 = vector.shape_cast %114 : vector<1x32x8xbf16> to vector<32x8xbf16>
    %cst_91 = arith.constant dense<0.000000e+00> : vector<8x8xf32>
    %116 = tpu.matmul %28, %115, %cst_91 {dimension_numbers = #tpu.dot_dimension_numbers<[1], [0], [0], [1], [0, 0, 1, 1], [], []>} : vector<8x32xbf16>, vector<32x8xbf16>, vector<8x8xf32> -> vector<8x8xf32>
    %117 = arith.truncf %116 : vector<8x8xf32> to vector<8x8xbf16>
    %c3_92 = arith.constant 3 : index
    %c0_93 = arith.constant 0 : index
    %c0_94 = arith.constant 0 : index
    %118 = vector.load %arg17[%c3_92, %c0_93, %c0_94] : memref<4x8x8xbf16, #tpu.memory_space<vmem>>, vector<1x8x8xbf16>
    %119 = vector.shape_cast %118 : vector<1x8x8xbf16> to vector<8x8xbf16>
    %120 = vector.shape_cast %117 : vector<8x8xbf16> to vector<1x8x8xbf16>
    tpu.vector_store %arg17[%c3_92, %c0_93, %c0_94], %120 {strides = array<i32>} : memref<4x8x8xbf16, #tpu.memory_space<vmem>>, vector<1x8x8xbf16>,
    %c0_95 = arith.constant 0 : index
    %c0_96 = arith.constant 0 : index
    %c0_97 = arith.constant 0 : index
    %121 = vector.load %arg15[%c0_95, %c0_96, %c0_97] : memref<4x8x8xbf16, #tpu.memory_space<vmem>>, vector<4x8x8xbf16>
    %c0_98 = arith.constant 0 : index
    %c0_99 = arith.constant 0 : index
    %c0_100 = arith.constant 0 : index
    %122 = vector.load %arg16[%c0_98, %c0_99, %c0_100] : memref<4x8x8xbf16, #tpu.memory_space<vmem>>, vector<4x8x8xbf16>
    "tpu.trace_start"() <{level = 10 : i32, message = "hqd,hkd->hqk"}> : () -> ()
    %cst_101 = arith.constant dense<0.000000e+00> : vector<4x8x8xf32>
    %123 = tpu.matmul %121, %122, %cst_101 {dimension_numbers = #tpu.dot_dimension_numbers<[2], [2], [1], [1], [0, 0, 0, 1, 1, 1], [0], [0]>} : vector<4x8x8xbf16>, vector<4x8x8xbf16>, vector<4x8x8xf32> -> vector<4x8x8xf32>
    "tpu.trace_stop"() : () -> ()
    %cst_102 = arith.constant dense<0xFF800000> : vector<4x8xf32>
    %124 = vector.multi_reduction <maximumf>, %123, %cst_102 [2] : vector<4x8x8xf32> to vector<4x8xf32>
    %125 = vector.shape_cast %124 : vector<4x8xf32> to vector<4x8x1xf32>
    %126 = vector.broadcast %125 : vector<4x8x1xf32> to vector<4x8x8xf32>
    %127 = arith.subf %123, %126 : vector<4x8x8xf32>
    %128 = math.exp %127 : vector<4x8x8xf32>
    %cst_103 = arith.constant dense<0.000000e+00> : vector<4x8xf32>
    %129 = vector.multi_reduction <add>, %128, %cst_103 [2] : vector<4x8x8xf32> to vector<4x8xf32>
    %130 = vector.shape_cast %129 : vector<4x8xf32> to vector<4x8x1xf32>
    %131 = tpu.reciprocal %130 {approx = true} : vector<4x8x1xf32> -> vector<4x8x1xf32>
    %132 = vector.broadcast %131 : vector<4x8x1xf32> to vector<4x8x8xf32>
    %133 = arith.mulf %128, %132 : vector<4x8x8xf32>
    %134 = arith.truncf %133 : vector<4x8x8xf32> to vector<4x8x8xbf16>
    %c0_104 = arith.constant 0 : index
    %c0_105 = arith.constant 0 : index
    %c0_106 = arith.constant 0 : index
    %135 = vector.load %arg17[%c0_104, %c0_105, %c0_106] : memref<4x8x8xbf16, #tpu.memory_space<vmem>>, vector<4x8x8xbf16>
    "tpu.trace_start"() <{level = 10 : i32, message = "hqk,hkd->hqd"}> : () -> ()
    %cst_107 = arith.constant dense<0.000000e+00> : vector<4x8x8xf32>
    %136 = tpu.matmul %134, %135, %cst_107 {dimension_numbers = #tpu.dot_dimension_numbers<[2], [1], [1], [2], [0, 0, 0, 1, 1, 2], [0], [0]>} : vector<4x8x8xbf16>, vector<4x8x8xbf16>, vector<4x8x8xf32> -> vector<4x8x8xf32>
    %cst_108 = arith.constant 0.000000e+00 : f32
    "tpu.trace_stop"() : () -> ()
    %137 = vector.broadcast %cst_108 : f32 to vector<8x32xf32>
    %138 = vector.extract_strided_slice %136 {offsets = [0, 0, 0], sizes = [1, 8, 8], strides = [1, 1, 1]} : vector<4x8x8xf32> to vector<1x8x8xf32>
    %139 = vector.shape_cast %138 : vector<1x8x8xf32> to vector<8x8xf32>
    %140 = arith.truncf %139 : vector<8x8xf32> to vector<8x8xbf16>
    %c0_109 = arith.constant 0 : index
    %c0_110 = arith.constant 0 : index
    %c0_111 = arith.constant 0 : index
    %141 = vector.load %arg5[%c0_109, %c0_110, %c0_111] : memref<4x8x32xbf16, #tpu.memory_space<vmem>>, vector<1x8x32xbf16>
    %142 = vector.shape_cast %141 : vector<1x8x32xbf16> to vector<8x32xbf16>
    %cst_112 = arith.constant dense<0.000000e+00> : vector<8x32xf32>
    %143 = tpu.matmul %140, %142, %cst_112 {dimension_numbers = #tpu.dot_dimension_numbers<[1], [0], [0], [1], [0, 0, 1, 1], [], []>} : vector<8x8xbf16>, vector<8x32xbf16>, vector<8x32xf32> -> vector<8x32xf32>
    %144 = arith.addf %137, %143 : vector<8x32xf32>
    %145 = vector.extract_strided_slice %136 {offsets = [1, 0, 0], sizes = [1, 8, 8], strides = [1, 1, 1]} : vector<4x8x8xf32> to vector<1x8x8xf32>
    %146 = vector.shape_cast %145 : vector<1x8x8xf32> to vector<8x8xf32>
    %147 = arith.truncf %146 : vector<8x8xf32> to vector<8x8xbf16>
    %c1_113 = arith.constant 1 : index
    %c0_114 = arith.constant 0 : index
    %c0_115 = arith.constant 0 : index
    %148 = vector.load %arg5[%c1_113, %c0_114, %c0_115] : memref<4x8x32xbf16, #tpu.memory_space<vmem>>, vector<1x8x32xbf16>
    %149 = vector.shape_cast %148 : vector<1x8x32xbf16> to vector<8x32xbf16>
    %cst_116 = arith.constant dense<0.000000e+00> : vector<8x32xf32>
    %150 = tpu.matmul %147, %149, %cst_116 {dimension_numbers = #tpu.dot_dimension_numbers<[1], [0], [0], [1], [0, 0, 1, 1], [], []>} : vector<8x8xbf16>, vector<8x32xbf16>, vector<8x32xf32> -> vector<8x32xf32>
    %151 = arith.addf %144, %150 : vector<8x32xf32>
    %152 = vector.extract_strided_slice %136 {offsets = [2, 0, 0], sizes = [1, 8, 8], strides = [1, 1, 1]} : vector<4x8x8xf32> to vector<1x8x8xf32>
    %153 = vector.shape_cast %152 : vector<1x8x8xf32> to vector<8x8xf32>
    %154 = arith.truncf %153 : vector<8x8xf32> to vector<8x8xbf16>
    %c2_117 = arith.constant 2 : index
    %c0_118 = arith.constant 0 : index
    %c0_119 = arith.constant 0 : index
    %155 = vector.load %arg5[%c2_117, %c0_118, %c0_119] : memref<4x8x32xbf16, #tpu.memory_space<vmem>>, vector<1x8x32xbf16>
    %156 = vector.shape_cast %155 : vector<1x8x32xbf16> to vector<8x32xbf16>
    %cst_120 = arith.constant dense<0.000000e+00> : vector<8x32xf32>
    %157 = tpu.matmul %154, %156, %cst_120 {dimension_numbers = #tpu.dot_dimension_numbers<[1], [0], [0], [1], [0, 0, 1, 1], [], []>} : vector<8x8xbf16>, vector<8x32xbf16>, vector<8x32xf32> -> vector<8x32xf32>
    %158 = arith.addf %151, %157 : vector<8x32xf32>
    %159 = vector.extract_strided_slice %136 {offsets = [3, 0, 0], sizes = [1, 8, 8], strides = [1, 1, 1]} : vector<4x8x8xf32> to vector<1x8x8xf32>
    %160 = vector.shape_cast %159 : vector<1x8x8xf32> to vector<8x8xf32>
    %161 = arith.truncf %160 : vector<8x8xf32> to vector<8x8xbf16>
    %c3_121 = arith.constant 3 : index
    %c0_122 = arith.constant 0 : index
    %c0_123 = arith.constant 0 : index
    %162 = vector.load %arg5[%c3_121, %c0_122, %c0_123] : memref<4x8x32xbf16, #tpu.memory_space<vmem>>, vector<1x8x32xbf16>
    %163 = vector.shape_cast %162 : vector<1x8x32xbf16> to vector<8x32xbf16>
    %cst_124 = arith.constant dense<0.000000e+00> : vector<8x32xf32>
    %164 = tpu.matmul %161, %163, %cst_124 {dimension_numbers = #tpu.dot_dimension_numbers<[1], [0], [0], [1], [0, 0, 1, 1], [], []>} : vector<8x8xbf16>, vector<8x32xbf16>, vector<8x32xf32> -> vector<8x32xf32>
    %165 = arith.addf %158, %164 : vector<8x32xf32>
    %166 = arith.addf %1, %165 : vector<8x32xf32>
    %c0_125 = arith.constant 0 : index
    %c0_126 = arith.constant 0 : index
    %167 = vector.load %arg8[%c0_125, %c0_126] : memref<1x32xf32, #tpu.memory_space<vmem>>, vector<1x32xf32>
    %168 = vector.shape_cast %167 : vector<1x32xf32> to vector<32xf32>
    %c0_127 = arith.constant 0 : index
    %c0_128 = arith.constant 0 : index
    %169 = vector.load %arg9[%c0_127, %c0_128] : memref<1x32xf32, #tpu.memory_space<vmem>>, vector<1x32xf32>
    %170 = vector.shape_cast %169 : vector<1x32xf32> to vector<32xf32>
    %cst_129 = arith.constant dense<0.000000e+00> : vector<8xf32>
    %171 = vector.multi_reduction <add>, %166, %cst_129 [1] : vector<8x32xf32> to vector<8xf32>
    %172 = vector.shape_cast %171 : vector<8xf32> to vector<8x1xf32>
    %cst_130 = arith.constant 3.200000e+01 : f32
    %173 = vector.broadcast %cst_130 : f32 to vector<8x1xf32>
    %174 = arith.divf %172, %173 : vector<8x1xf32>
    %175 = vector.broadcast %174 : vector<8x1xf32> to vector<8x32xf32>
    %176 = arith.subf %166, %175 : vector<8x32xf32>
    %177 = arith.mulf %176, %176 : vector<8x32xf32>
    %cst_131 = arith.constant dense<0.000000e+00> : vector<8xf32>
    %178 = vector.multi_reduction <add>, %177, %cst_131 [1] : vector<8x32xf32> to vector<8xf32>
    %179 = vector.shape_cast %178 : vector<8xf32> to vector<8x1xf32>
    %cst_132 = arith.constant 3.200000e+01 : f32
    %180 = vector.broadcast %cst_132 : f32 to vector<8x1xf32>
    %181 = arith.divf %179, %180 : vector<8x1xf32>
    %cst_133 = arith.constant 9.99999974E-6 : f32
    %182 = vector.broadcast %cst_133 : f32 to vector<8x1xf32>
    %183 = arith.addf %181, %182 : vector<8x1xf32>
    %184 = math.rsqrt %183 : vector<8x1xf32>
    %185 = vector.broadcast %184 : vector<8x1xf32> to vector<8x32xf32>
    %186 = arith.mulf %176, %185 : vector<8x32xf32>
    %187 = vector.shape_cast %168 : vector<32xf32> to vector<1x32xf32>
    %188 = vector.broadcast %187 : vector<1x32xf32> to vector<8x32xf32>
    %189 = arith.mulf %186, %188 : vector<8x32xf32>
    %190 = vector.shape_cast %170 : vector<32xf32> to vector<1x32xf32>
    %191 = vector.broadcast %190 : vector<1x32xf32> to vector<8x32xf32>
    %192 = arith.addf %189, %191 : vector<8x32xf32>
    %193 = arith.truncf %192 : vector<8x32xf32> to vector<8x32xbf16>
    %c0_134 = arith.constant 0 : index
    %c0_135 = arith.constant 0 : index
    %194 = vector.load %arg10[%c0_134, %c0_135] : memref<32x128xbf16, #tpu.memory_space<vmem>>, vector<32x128xbf16>
    %cst_136 = arith.constant dense<0.000000e+00> : vector<8x128xf32>
    %195 = tpu.matmul %193, %194, %cst_136 {dimension_numbers = #tpu.dot_dimension_numbers<[1], [0], [0], [1], [0, 0, 1, 1], [], []>} : vector<8x32xbf16>, vector<32x128xbf16>, vector<8x128xf32> -> vector<8x128xf32>
    %c0_137 = arith.constant 0 : index
    %c0_138 = arith.constant 0 : index
    %196 = vector.load %arg11[%c0_137, %c0_138] : memref<1x128xf32, #tpu.memory_space<vmem>>, vector<1x128xf32>
    %197 = vector.shape_cast %196 : vector<1x128xf32> to vector<128xf32>
    %198 = vector.shape_cast %197 : vector<128xf32> to vector<1x128xf32>
    %199 = vector.broadcast %198 : vector<1x128xf32> to vector<8x128xf32>
    %200 = arith.addf %195, %199 : vector<8x128xf32>
    %cst_139 = arith.constant dense<0xFF800000> : vector<8xf32>
    %201 = vector.multi_reduction <maximumf>, %200, %cst_139 [1] : vector<8x128xf32> to vector<8xf32>
    %202 = vector.shape_cast %201 : vector<8xf32> to vector<8x1xf32>
    %203 = vector.broadcast %202 : vector<8x1xf32> to vector<8x128xf32>
    %204 = arith.subf %200, %203 : vector<8x128xf32>
    %205 = math.exp %204 : vector<8x128xf32>
    %cst_140 = arith.constant dense<0.000000e+00> : vector<8xf32>
    %206 = vector.multi_reduction <add>, %205, %cst_140 [1] : vector<8x128xf32> to vector<8xf32>
    %207 = vector.shape_cast %206 : vector<8xf32> to vector<8x1xf32>
    %208 = tpu.reciprocal %207 {approx = true} : vector<8x1xf32> -> vector<8x1xf32>
    %209 = vector.broadcast %208 : vector<8x1xf32> to vector<8x128xf32>
    %210 = arith.mulf %205, %209 : vector<8x128xf32>
    %211 = arith.truncf %210 : vector<8x128xf32> to vector<8x128xbf16>
    %c0_141 = arith.constant 0 : index
    %c0_142 = arith.constant 0 : index
    %212 = vector.load %arg12[%c0_141, %c0_142] : memref<128x32xbf16, #tpu.memory_space<vmem>>, vector<128x32xbf16>
    %cst_143 = arith.constant dense<0.000000e+00> : vector<8x32xf32>
    %213 = tpu.matmul %211, %212, %cst_143 {dimension_numbers = #tpu.dot_dimension_numbers<[1], [0], [0], [1], [0, 0, 1, 1], [], []>} : vector<8x128xbf16>, vector<128x32xbf16>, vector<8x32xf32> -> vector<8x32xf32>
    %c0_144 = arith.constant 0 : index
    %c0_145 = arith.constant 0 : index
    %214 = vector.load %arg13[%c0_144, %c0_145] : memref<1x32xf32, #tpu.memory_space<vmem>>, vector<1x32xf32>
    %215 = vector.shape_cast %214 : vector<1x32xf32> to vector<32xf32>
    %216 = vector.shape_cast %215 : vector<32xf32> to vector<1x32xf32>
    %217 = vector.broadcast %216 : vector<1x32xf32> to vector<8x32xf32>
    %218 = arith.addf %213, %217 : vector<8x32xf32>
    %219 = arith.addf %166, %218 : vector<8x32xf32>
    %c0_146 = arith.constant 0 : index
    %c0_147 = arith.constant 0 : index
    %c0_148 = arith.constant 0 : index
    %220 = vector.load %arg14[%c0_146, %c0_147, %c0_148] : memref<1x8x32xf32, #tpu.memory_space<vmem>>, vector<1x8x32xf32>
    %221 = vector.shape_cast %220 : vector<1x8x32xf32> to vector<8x32xf32>
    %222 = vector.shape_cast %219 : vector<8x32xf32> to vector<1x8x32xf32>
    tpu.vector_store %arg14[%c0_146, %c0_147, %c0_148], %222 {strides = array<i32>} : memref<1x8x32xf32, #tpu.memory_space<vmem>>, vector<1x8x32xf32>,
    return
  }
  func.func @transform_0(%arg0: i32) -> (i32, i32, i32) {
    %c0_i32 = arith.constant 0 : i32
    %c0_i32_0 = arith.constant 0 : i32
    %c0_i32_1 = arith.constant 0 : i32
    return %arg0, %c0_i32, %c0_i32_0 : i32, i32, i32
  }
  func.func @transform_1(%arg0: i32) -> (i32, i32, i32) {
    %c0_i32 = arith.constant 0 : i32
    %c0_i32_0 = arith.constant 0 : i32
    %c0_i32_1 = arith.constant 0 : i32
    %c0_i32_2 = arith.constant 0 : i32
    return %c0_i32, %c0_i32_0, %c0_i32_1 : i32, i32, i32
  }
  func.func @transform_2(%arg0: i32) -> (i32, i32, i32) {
    %c0_i32 = arith.constant 0 : i32
    %c0_i32_0 = arith.constant 0 : i32
    %c0_i32_1 = arith.constant 0 : i32
    %c0_i32_2 = arith.constant 0 : i32
    return %c0_i32, %c0_i32_0, %c0_i32_1 : i32, i32, i32
  }
  func.func @transform_3(%arg0: i32) -> (i32, i32, i32) {
    %c0_i32 = arith.constant 0 : i32
    %c0_i32_0 = arith.constant 0 : i32
    %c0_i32_1 = arith.constant 0 : i32
    %c0_i32_2 = arith.constant 0 : i32
    return %c0_i32, %c0_i32_0, %c0_i32_1 : i32, i32, i32
  }
  func.func @transform_4(%arg0: i32) -> (i32, i32, i32) {
    %c0_i32 = arith.constant 0 : i32
    %c0_i32_0 = arith.constant 0 : i32
    %c0_i32_1 = arith.constant 0 : i32
    %c0_i32_2 = arith.constant 0 : i32
    return %c0_i32, %c0_i32_0, %c0_i32_1 : i32, i32, i32
  }
  func.func @transform_5(%arg0: i32) -> (i32, i32) {
    %c0_i32 = arith.constant 0 : i32
    %c0_i32_0 = arith.constant 0 : i32
    %c0_i32_1 = arith.constant 0 : i32
    return %c0_i32, %c0_i32_0 : i32, i32
  }
  func.func @transform_6(%arg0: i32) -> (i32, i32) {
    %c0_i32 = arith.constant 0 : i32
    %c0_i32_0 = arith.constant 0 : i32
    %c0_i32_1 = arith.constant 0 : i32
    return %c0_i32, %c0_i32_0 : i32, i32
  }
  func.func @transform_7(%arg0: i32) -> (i32, i32) {
    %c0_i32 = arith.constant 0 : i32
    %c0_i32_0 = arith.constant 0 : i32
    %c0_i32_1 = arith.constant 0 : i32
    return %c0_i32, %c0_i32_0 : i32, i32
  }
  func.func @transform_8(%arg0: i32) -> (i32, i32) {
    %c0_i32 = arith.constant 0 : i32
    %c0_i32_0 = arith.constant 0 : i32
    %c0_i32_1 = arith.constant 0 : i32
    return %c0_i32, %c0_i32_0 : i32, i32
  }
  func.func @transform_9(%arg0: i32) -> (i32, i32) {
    %c0_i32 = arith.constant 0 : i32
    %c0_i32_0 = arith.constant 0 : i32
    %c0_i32_1 = arith.constant 0 : i32
    return %c0_i32, %c0_i32_0 : i32, i32
  }
  func.func @transform_10(%arg0: i32) -> (i32, i32) {
    %c0_i32 = arith.constant 0 : i32
    %c0_i32_0 = arith.constant 0 : i32
    %c0_i32_1 = arith.constant 0 : i32
    return %c0_i32, %c0_i32_0 : i32, i32
  }
  func.func @transform_11(%arg0: i32) -> (i32, i32) {
    %c0_i32 = arith.constant 0 : i32
    %c0_i32_0 = arith.constant 0 : i32
    %c0_i32_1 = arith.constant 0 : i32
    return %c0_i32, %c0_i32_0 : i32, i32
  }
  func.func @transform_12(%arg0: i32) -> (i32, i32) {
    %c0_i32 = arith.constant 0 : i32
    %c0_i32_0 = arith.constant 0 : i32
    %c0_i32_1 = arith.constant 0 : i32
    return %c0_i32, %c0_i32_0 : i32, i32
  }
  func.func @transform_13(%arg0: i32) -> (i32, i32, i32) {
    %c0_i32 = arith.constant 0 : i32
    %c0_i32_0 = arith.constant 0 : i32
    %c0_i32_1 = arith.constant 0 : i32
    return %arg0, %c0_i32, %c0_i32_0 : i32, i32, i32
  }
}

</mosaic_0001>

<bundles_post_ra>
// kernel: tpu_custom_call.1
= control target key start
LH: loop header
LB: loop body
LE: loop exit
PB: predicated region body
PF: predicated region fallthrough
CT: control target
= control target key end

     0   :  { %s3143_s0 = inlined_call_operand.vmem [shape: f32[2,8,32], index: 0, kind: input, shape index: {}]   ;;  %s3144_s1 = inlined_call_operand.vmem [shape: bf16[4,32,8], index: 1, kind: input, shape index: {}]   ;;  %s3145_s2 = inlined_call_operand.vmem [shape: bf16[4,32,8], index: 2, kind: input, shape index: {}]   ;;  %s3146_s3 = inlined_call_operand.vmem [shape: bf16[4,32,8], index: 3, kind: input, shape index: {}]   ;;  %s3147_s4 = inlined_call_operand.vmem [shape: bf16[4,8,32], index: 4, kind: input, shape index: {}]   ;;  %s3148_s5 = inlined_call_operand.vmem [shape: f32[1,32], index: 5, kind: input, shape index: {}]   ;;  %s3149_s6 = inlined_call_operand.vmem [shape: f32[1,32], index: 6, kind: input, shape index: {}]   ;;  %s3150_s7 = inlined_call_operand.vmem [shape: f32[1,32], index: 7, kind: input, shape index: {}]   ;;  %s3151_s8 = inlined_call_operand.vmem [shape: f32[1,32], index: 8, kind: input, shape index: {}]   ;;  %s3152_s9 = inlined_call_operand.vmem [shape: bf16[32,128], index: 9, kind: input, shape index: {}]   ;;  %s3153_s10 = inlined_call_operand.vmem [shape: f32[1,128], index: 10, kind: input, shape index: {}]   ;;  %s3154_s11 = inlined_call_operand.vmem [shape: bf16[128,32], index: 11, kind: input, shape index: {}]   ;;  %s3155_s12 = inlined_call_operand.vmem [shape: f32[1,32], index: 12, kind: input, shape index: {}]   ;;  %s3156_s13 = inlined_call_operand.hbm [shape: f32[2,8,32], index: 13, kind: output, shape index: {}]  }
   0x1   :  { %3157 = sst [smem:[#allocation8_spill]] %s3143_s0 }
   0x2   :  { %3158 = sst [smem:[#allocation9_spill]] %s3144_s1 }
   0x3   :  { %3159 = sst [smem:[#allocation10_spill]] %s3145_s2 }
   0x4   :  { %18 = vsyncpa [#allocation6], 0 }
   0x5   :  { %20 = vsyncpa [#allocation6 + $0x1], 0  ;;  %s2728_s25 = smov 0   ;;  %s2730_s26 = smov 0  }
   0x6   :  { %s2732_s27 = smov 0   ;;  %s2734_s28 = smov 0  }
   0x7 LB: > { %s2749_s29 = sadd.s32 4294967295, %s2653_s28   ;;  %s2112_s30 = sadd.s32 4294967294, %s2653_s28   ;;  %s2653_s28 = sphi %s2734_s28, %s3168_s28   ;;  %s2649_s27 = sphi %s2732_s27, %s3167_s27   ;;  %s2645_s26 = sphi %s2730_s26, %s3166_s26   ;;  %s2641_s25 = sphi %s2728_s25, %s3165_s25  }
   0x8   : > { %s2753_s14 = sadd.s32 1, %s2653_s28   ;;  %s311_s15 = sadd.s32 1, %s2649_s27 }
   0x9   : > { %s308_s16 = ssub.s32 %s2653_s28, %s2753_s14  ;;  %p321_p0 = scmp.ne.s32.totalorder %s2649_s27, %s2645_s26 }
   0xa   : > { %p309_p1 = scmp.eq.s32.totalorder %s308_s16, 0  ;;  %p322_p2 = scmp.eq.s32.totalorder %s2749_s29, 1 }
   0xb   : > { %p327_p3 = scmp.ne.s32.totalorder %s2645_s26, %s2641_s25  ;;  %p328_p4 = scmp.eq.s32.totalorder %s2112_s30, 1 }
   0xc   : > { %s2764_s17 = scalar_select %p309_p1, %s2649_s27, %s311_s15  }
   0xd   : > { %p2766_p5 = por %p322_p2, %p321_p0  ;;  %p2770_p6 = por %p328_p4, %p327_p3 }
   0xe   : > { %p2115_p7 = scmp.ge.s32.totalorder %s2653_s28, 1  ;;  %p389_p8 = scmp.lt.s32.totalorder %s2653_s28, 3 }
  0x10   : > { %p390_p9 = pnand %p2115_p7, %p389_p8 }
  0x11   : > { %p432_p10 = scmp.lt.s32.totalorder (!%p390_p9), %s2749_s29, 1  ;;  %s3162_s0 = sld [smem:[#allocation8_spill]] (!%p390_p9) }
  0x12   : > { %393 = sbr.rel (%p390_p9) target bundleno = 2524 (0x9dc), region = 72  ;;  %s3163_s1 = sld [smem:[#allocation9_spill]] (!%p390_p9) }
  0x13   : > { %s3164_s2 = sld [smem:[#allocation10_spill]] (!%p390_p9)  ;;  %s429_s23 = sand.u32 (!%p390_p9), 1, %s2645_s26  }
  0x14   : > { %s2223_s16 = sshll.u32 (!%p390_p9), %s2749_s29, 7  ;;  %s2657_s30 = smov (!%p390_p9), [#allocation5]  }
  0x15   : > { %s2597_s15 = sshll.u32 (!%p390_p9), %s2657_s30, 4  ;;  %s2598_s15 = int_to_ptr.vmem [resolvable:$false] %s2597_s15 }
  0x17   : > { %s433_s20 = scalar_select %p432_p10, %s2749_s29, 1  ;;  %vm440_vm0 = vcmask 261120   ;;  %v2655_v9 = vmov 0.0   ;;  %vm2656_vm1 = vmmov 0   ;;  %v2118_v16 = vld [vmem:[%s3148_s5] ss:$0 sm:$0xff] }
  0x18   : > { %v2535_v7 = vld [vmem:[%s3163_s1 + $0x8] sm:$0xff]   ;;  %v2536_v8 = vld [vmem:[%s3163_s1 + $0x18] sm:$0xff]   ;;  %2298 = vmatprep.subr.bf16.mxu0 %v2655_v9  ;;  %2322 = vmatprep.subr.bf16.mxu1 %v2655_v9  ;;  %v2537_v10 = vld [vmem:[%s3163_s1] sm:$0xff]   ;;  %vm531_vm2 = vcmask 60416   ;;  %vm1200_vm3 = vcmask 64512   ;;  %vm1440_vm4 = vcmask 1043456  }
  0x19   : > { %s2117_s21 = sshll.u32 %s433_s20, 3  ;;  %2299 = vmatpush3.bf16.msra.mxu0 %v2535_v7  ;;  %2323 = vmatpush3.bf16.msra.mxu1 %v2536_v8  ;;  %v2538_v11 = vld [vmem:[%s3163_s1 + $0x10] sm:$0xff]   ;;  %v2119_v18 = vld [vmem:[%s3149_s6] ss:$0 sm:$0xff]  ;;  %v2539_v21 = vld [vmem:[%s3164_s2 + $0x8] sm:$0xff]   ;;  %s2040_s29 = scalar_lea.sflag [#allocation6], %s429_s23 }
  0x1a   : > { %s435_s24 = scalar_lea.vmem %s3162_s0, %s2117_s21  ;;  %2300 = vmatprep.subr.bf16.mxu0 %v2655_v9  ;;  %2324 = vmatprep.subr.bf16.mxu1 %v2655_v9  ;;  %v2540_v22 = vld [vmem:[%s3146_s3 + $0x18] sm:$0xff]   ;;  %v2541_v24 = vld [vmem:[%s3164_s2] sm:$0xff]   ;;  %v2542_v25 = vld [vmem:[%s3146_s3 + $0x10] sm:$0xff]   ;;  %s2599_s0 = scalar_lea.vmem %s2598_s15, 256 }
  0x1b   : > { %v2781_v0 = vld [vmem:[%s435_s24] sm:$0xff]  ;;  %2302 = vmatprep.mubr.msk.bf16.mxu0 %vm2656_vm1, %v2655_v9  ;;  %2326 = vmatprep.mubr.msk.bf16.mxu1 %vm2656_vm1, %v2655_v9  ;;  %v2543_v26 = vld [vmem:[%s3146_s3 + $0x8] sm:$0xff]   ;;  %v2547_v30 = vld [vmem:[%s3164_s2 + $0x18] sm:$0xff]   ;;  %s2116_s24 = sshll.u32 %s429_s23, 3 }
  0x1c   : > { %v441_v1 = vsel %vm440_vm0, %v2781_v0, 0.0  ;;  %v2544_v27 = vld [vmem:[%s3164_s2 + $0x28] sm:$0xff]   ;;  %v2545_v28 = vld [vmem:[%s3146_s3] sm:$0xff]   ;;  %v2548_v31 = vld [vmem:[%s3163_s1 + $0x38] sm:$0xff]   ;;  %s431_s20 = scalar_lea.vmem [#allocation5], %s2116_s24 }
  0x1d   : > { %442 = vadd.xlane.f32.xlu0 %v441_v1  ;;  %2301 = vmatpush3.bf16.msra.mxu0 %v2537_v10  ;;  %v2546_v29 = vld [vmem:[%s3164_s2 + $0x20] sm:$0xff]   ;;  %v2549_v32 = vld [vmem:[%s3164_s2 + $0x10] sm:$0xff]   ;;  %v2551_v34 = vld [vmem:[%s3163_s1 + $0x28] sm:$0xff]   ;;  %s2053_s21 = sshll.u32 %s431_s20, 4  ;;  %s3103_s21 = int_to_ptr.vmem [resolvable:$true] %s2053_s21 }
  0x1e   : > { %2325 = vmatpush3.bf16.msra.mxu1 %v2538_v11  ;;  %2306 = vmatprep.subr.bf16.mxu0 %v2655_v9  ;;  %v2550_v33 = vld [vmem:[%s3163_s1 + $0x30] sm:$0xff]   ;;  %v2552_v35 = vld [vmem:[%s3146_s3 + $0x38] sm:$0xff]   ;;  %v2553_v36 = vld [vmem:[%s3163_s1 + $0x20] sm:$0xff]   ;;  %s3101_s1 = scalar_lea.hbm %s3156_s13, %s2223_s16  ;;  %s2593_s24 = scalar_lea.vmem %s3103_s21, 128 }
  0x1f   : > { %2338 = vmatprep.subr.bf16.mxu1 %v2655_v9  ;;  %v2554_v37 = vld [vmem:[%s3146_s3 + $0x30] sm:$0xff]   ;;  %v2555_v38 = vld [vmem:[%s3146_s3 + $0x28] sm:$0xff]   ;;  %v2556_v39 = vld [vmem:[%s3146_s3 + $0x20] sm:$0xff]   ;;  %p2594_p11 = scmp.ne.s32.totalorder %s3103_s21, %s2593_s24  ;;  %p2600_p0 = scmp.lt.s32.totalorder %s3103_s21, %s2598_s15 }
  0x20   : > { %v2557_v40 = vld [vmem:[%s3164_s2 + $0x38] sm:$0xff]   ;;  %v2558_v41 = vld [vmem:[%s3164_s2 + $0x30] sm:$0xff]   ;;  %p2601_p1 = scmp.lt.s32.totalorder %s2599_s0, %s2593_s24 }
  0x21   : > { %p2595_p12 = pnand %p2594_p11, %p2766_p5 }
  0x22   : > { %p2602_p2 = por %p2601_p1, %p2600_p0 }
  0x23   : > { %p2596_p13 = pneg %p2595_p12 }
  0x25   : > { %p2603_p3 = pnand %p2602_p2, %p2596_p13 }
  0xa6   : > { %v443_v2 = vpop.xlane.xlu0 %442 }
  0xa7   : > { %v445_v3 = vmul.f32 0.03125, %v443_v2 }
  0xa9   : > { %v446_v4 = vsub.f32 %v2781_v0, %v445_v3 }
  0xab   : > { %v447_v5 = vmul.f32 %v446_v4, %v446_v4 }
  0xad   : > { %v448_v6 = vsel %vm440_vm0, %v447_v5, 0.0 }
  0xae   : > { %449 = vadd.xlane.f32.xlu0 %v448_v6 }
 0x137   : > { %v450_v12 = vpop.xlane.xlu0 %449 }
 0x138   : > { %v451_v13 = vmul.f32 0.03125, %v450_v12 }
 0x13a   : > { %v452_v14 = vadd.f32 1e-05, %v451_v13 }
 0x13c   : > { %2569 = vrsqrt.f32 %v452_v14 }
 0x149   : > { %v2570_v15 = vpop.eup %2569 }
 0x14a   : > { %v454_v17 = vmul.f32 %v2570_v15, %v446_v4 }
 0x14c   : > { %v461_v19 = vmul.f32 %v2118_v16, %v454_v17 }
 0x14e   : > { %v468_v20 = vadd.f32 %v2119_v18, %v461_v19 }
 0x150   : > { %v2821_v23 = vpack.c.bf16 %v468_v20, %v468_v20 }
 0x152   : > { %2303 = vmatmul.mubr.msk.bf16.vlgmr.msra.gmra.mxu0 %vm440_vm0, %v2821_v23  ;;  %2327 = vmatmul.mubr.msk.bf16.vlgmr.msra.gmra.mxu1 %vm440_vm0, %v2821_v23 }
 0x153   : > { %2307 = vmatpush3.bf16.msra.mxu0 %v2539_v21  ;;  %2339 = vmatpush3.bf16.msra.mxu1 %v2540_v22 }
 0x154   : > { %2308 = vmatprep.subr.bf16.mxu0 %v2655_v9  ;;  %2340 = vmatprep.subr.bf16.mxu1 %v2655_v9 }
 0x155   : > { %2310 = vmatprep.mubr.msk.bf16.mxu0 %vm2656_vm1, %v2655_v9  ;;  %2342 = vmatprep.mubr.msk.bf16.mxu1 %vm2656_vm1, %v2655_v9 }
 0x157   : > { %2309 = vmatpush3.bf16.msra.mxu0 %v2541_v24  ;;  %2341 = vmatpush3.bf16.msra.mxu1 %v2542_v25 }
 0x158   : > { %2314 = vmatprep.subr.bf16.mxu0 %v2655_v9  ;;  %2354 = vmatprep.subr.bf16.mxu1 %v2655_v9 }
 0x15a   : > { %2311 = vmatmul.mubr.msk.bf16.vlgmr.msra.gmra.mxu0 %vm440_vm0, %v2821_v23  ;;  %2343 = vmatmul.mubr.msk.bf16.vlgmr.msra.gmra.mxu1 %vm440_vm0, %v2821_v23 }
 0x15b   : > { %2315 = vmatpush3.bf16.msra.mxu0 %v2543_v26  ;;  %2355 = vmatpush3.bf16.msra.mxu1 %v2544_v27 }
 0x15c   : > { %2316 = vmatprep.subr.bf16.mxu0 %v2655_v9  ;;  %2356 = vmatprep.subr.bf16.mxu1 %v2655_v9 }
 0x15d   : > { %2318 = vmatprep.mubr.msk.bf16.mxu0 %vm2656_vm1, %v2655_v9  ;;  %2358 = vmatprep.mubr.msk.bf16.mxu1 %vm2656_vm1, %v2655_v9 }
 0x15f   : > { %2317 = vmatpush3.bf16.msra.mxu0 %v2545_v28  ;;  %2357 = vmatpush3.bf16.msra.mxu1 %v2546_v29 }
 0x160   : > { %2330 = vmatprep.subr.bf16.mxu0 %v2655_v9  ;;  %2370 = vmatprep.subr.bf16.mxu1 %v2655_v9 }
 0x162   : > { %2319 = vmatmul.mubr.msk.bf16.vlgmr.msra.gmra.mxu0 %vm440_vm0, %v2821_v23  ;;  %2359 = vmatmul.mubr.msk.bf16.vlgmr.msra.gmra.mxu1 %vm440_vm0, %v2821_v23 }
 0x163   : > { %2331 = vmatpush3.bf16.msra.mxu0 %v2547_v30  ;;  %2371 = vmatpush3.bf16.msra.mxu1 %v2548_v31 }
 0x164   : > { %2332 = vmatprep.subr.bf16.mxu0 %v2655_v9  ;;  %2372 = vmatprep.subr.bf16.mxu1 %v2655_v9 }
 0x165   : > { %2334 = vmatprep.mubr.msk.bf16.mxu0 %vm2656_vm1, %v2655_v9  ;;  %2374 = vmatprep.mubr.msk.bf16.mxu1 %vm2656_vm1, %v2655_v9 }
 0x167   : > { %2333 = vmatpush3.bf16.msra.mxu0 %v2549_v32  ;;  %2373 = vmatpush3.bf16.msra.mxu1 %v2550_v33 }
 0x168   : > { %2346 = vmatprep.subr.bf16.mxu0 %v2655_v9  ;;  %2386 = vmatprep.subr.bf16.mxu1 %v2655_v9 }
 0x16a   : > { %2335 = vmatmul.mubr.msk.bf16.vlgmr.msra.gmra.mxu0 %vm440_vm0, %v2821_v23  ;;  %2375 = vmatmul.mubr.msk.bf16.vlgmr.msra.gmra.mxu1 %vm440_vm0, %v2821_v23 }
 0x16b   : > { %2347 = vmatpush3.bf16.msra.mxu0 %v2551_v34  ;;  %2387 = vmatpush3.bf16.msra.mxu1 %v2552_v35 }
 0x16c   : > { %2348 = vmatprep.subr.bf16.mxu0 %v2655_v9  ;;  %2388 = vmatprep.subr.bf16.mxu1 %v2655_v9 }
 0x16d   : > { %2350 = vmatprep.mubr.msk.bf16.mxu0 %vm2656_vm1, %v2655_v9  ;;  %2390 = vmatprep.mubr.msk.bf16.mxu1 %vm2656_vm1, %v2655_v9 }
 0x16f   : > { %2349 = vmatpush3.bf16.msra.mxu0 %v2553_v36  ;;  %2389 = vmatpush3.bf16.msra.mxu1 %v2554_v37 }
 0x170   : > { %2362 = vmatprep.subr.bf16.mxu0 %v2655_v9  ;;  %2400 = vmatprep.subr.bf16.mxu1 %v2655_v9 }
 0x172   : > { %2351 = vmatmul.mubr.msk.bf16.vlgmr.msra.gmra.mxu0 %vm440_vm0, %v2821_v23  ;;  %2391 = vmatmul.mubr.msk.bf16.vlgmr.msra.gmra.mxu1 %vm440_vm0, %v2821_v23 }
 0x173   : > { %2363 = vmatpush3.bf16.msra.mxu0 %v2555_v38  ;;  %2366 = vmatprep.mubr.msk.bf16.mxu0 %vm2656_vm1, %v2655_v9 }
 0x174   : > { %2364 = vmatprep.subr.bf16.mxu0 %v2655_v9  ;;  %2402 = vmatprep.mubr.msk.bf16.mxu1 %vm2656_vm1, %v2655_v9 }
 0x177   : > { %2365 = vmatpush3.bf16.msra.mxu0 %v2556_v39 }
 0x178   : > { %2378 = vmatprep.subr.bf16.mxu0 %v2655_v9 }
 0x17a   : > { %2367 = vmatmul.mubr.msk.bf16.vlgmr.msra.gmra.mxu0 %vm440_vm0, %v2821_v23 }
 0x17b   : > { %2379 = vmatpush3.bf16.msra.mxu0 %v2557_v40  ;;  %2382 = vmatprep.mubr.msk.bf16.mxu0 %vm2656_vm1, %v2655_v9 }
 0x17c   : > { %2380 = vmatprep.subr.bf16.mxu0 %v2655_v9 }
 0x17f   : > { %2381 = vmatpush3.bf16.msra.mxu0 %v2558_v41 }
 0x180   : > { %2394 = vmatprep.subr.bf16.mxu0 %v2655_v9 }
 0x182   : > { %2383 = vmatmul.mubr.msk.bf16.vlgmr.msra.gmra.mxu0 %vm440_vm0, %v2821_v23 }
 0x183   : > { %2396 = vmatprep.mubr.msk.bf16.mxu0 %vm2656_vm1, %v2655_v9 }
 0x212   : > { %v523_v42 = vpop.f32.mrf.mxu0  ;;  %v700_v43 = vpop.f32.mrf.mxu1 }
 0x213   : > { %v529_v44 = vmul.f32 0.35355338, %v523_v42  ;;  %v706_v45 = vmul.f32 0.35355338, %v700_v43 }
 0x214   : > { %v2304_v46 = vpop.f32.mrf.mxu0  ;;  %v2328_v47 = vpop.f32.mrf.mxu1 }
 0x215   : > { %v530_v48 = vpack.c.bf16 %v529_v44, %v529_v44  ;;  %v707_v49 = vpack.c.bf16 %v706_v45, %v706_v45 }
 0x216   : > { %v526_v50 = vpop.f32.mrf.mxu0  ;;  %v703_v51 = vpop.f32.mrf.mxu1 }
 0x217   : > { %532 = vst.msk [vmem:[#allocation2] sm:$0xf] %vm531_vm2, %v530_v48  ;;  %709 = vst.msk [vmem:[#allocation2 + $0x4] sm:$0xf] %vm531_vm2, %v707_v49 }
 0x218   : > { %v2305_v52 = vpop.f32.mrf.mxu0  ;;  %v2329_v53 = vpop.f32.mrf.mxu1 }
 0x21a   : > { %v583_v54 = vpop.f32.mrf.mxu0  ;;  %v821_v55 = vpop.f32.mrf.mxu1 }
 0x21b   : > { %v589_v56 = vpack.c.bf16 %v583_v54, %v583_v54  ;;  %v827_v57 = vpack.c.bf16 %v821_v55, %v821_v55 }
 0x21c   : > { %v2312_v58 = vpop.f32.mrf.mxu0  ;;  %v2344_v59 = vpop.f32.mrf.mxu1 }
 0x21d   : > { %590 = vst.msk [vmem:[#allocation3] sm:$0xf] %vm531_vm2, %v589_v56  ;;  %829 = vst.msk [vmem:[#allocation4 + $0x4] sm:$0xf] %vm531_vm2, %v827_v57 }
 0x21e   : > { %v586_v60 = vpop.f32.mrf.mxu0  ;;  %v824_v61 = vpop.f32.mrf.mxu1  ;;  %v1192_v20 = vld [vmem:[#allocation2] sm:$0xf]  ;;  %v1193_v44 = vld [vmem:[#allocation2 + $0x4] sm:$0xf] }
 0x220   : > { %v2313_v62 = vpop.f32.mrf.mxu0  ;;  %v2345_v63 = vpop.f32.mrf.mxu1 }
 0x222   : > { %v641_v1 = vpop.f32.mrf.mxu0  ;;  %v942_v2 = vpop.f32.mrf.mxu1 }
 0x223   : > { %v647_v3 = vpack.c.bf16 %v641_v1, %v641_v1  ;;  %v948_v4 = vpack.c.bf16 %v942_v2, %v942_v2 }
 0x224   : > { %v2320_v5 = vpop.f32.mrf.mxu0  ;;  %v2360_v6 = vpop.f32.mrf.mxu1  ;;  %v1196_v7 = vld [vmem:[#allocation3] sm:$0xf]  ;;  %v1434_v57 = vld [vmem:[#allocation4 + $0x4] sm:$0xf] }
 0x225   : > { %648 = vst.msk [vmem:[#allocation4] sm:$0xf] %vm531_vm2, %v647_v3  ;;  %950 = vst.msk [vmem:[#allocation3 + $0x8] sm:$0xf] %vm531_vm2, %v948_v4  ;;  %v1205_v8 = vsel %vm1200_vm3, %v1196_v7, 0  ;;  %v1488_v59 = vsel %vm1440_vm4, %v1434_v57, 0 }
 0x226   : > { %v644_v10 = vpop.f32.mrf.mxu0  ;;  %v945_v11 = vpop.f32.mrf.mxu1  ;;  %2395 = vmatpush3.bf16.xpose.msra.mxu0 %v1205_v8 }
 0x227   : > { %2406 = vmatprep.subr.bf16.mxu0 %v2655_v9 }
 0x228   : > { %v2321_v12 = vpop.f32.mrf.mxu0  ;;  %v2361_v13 = vpop.f32.mrf.mxu1 }
 0x22a   : > { %v761_v14 = vpop.f32.mrf.mxu0  ;;  %v1062_v15 = vpop.f32.mrf.mxu1 }
 0x22b   : > { %v767_v16 = vpack.c.bf16 %v761_v14, %v761_v14  ;;  %v1068_v17 = vmul.f32 0.35355338, %v1062_v15 }
 0x22c   : > { %v2336_v18 = vpop.f32.mrf.mxu0  ;;  %v2376_v19 = vpop.f32.mrf.mxu1  ;;  %v1198_v21 = vld [vmem:[#allocation3 + $0x8] sm:$0xf]  ;;  %v1433_v45 = vld [vmem:[#allocation4] sm:$0xf] }
 0x22d   : > { %769 = vst.msk [vmem:[#allocation3 + $0x4] sm:$0xf] %vm531_vm2, %v767_v16  ;;  %v1069_v22 = vpack.c.bf16 %v1068_v17, %v1068_v17  ;;  %2397 = vmatmul.mubr.msk.bf16.vlgmr.msra.gmra.mxu0 %vm1200_vm3, %v1192_v20  ;;  %v1297_v23 = vsel %vm1200_vm3, %v1198_v21, 0  ;;  %v1442_v48 = vsel %vm1440_vm4, %v1433_v45, 0 }
 0x22e   : > { %v764_v24 = vpop.f32.mrf.mxu0  ;;  %v1065_v25 = vpop.f32.mrf.mxu1  ;;  %2407 = vmatpush3.bf16.xpose.msra.mxu0 %v1297_v23  ;;  %2408 = vmatprep.mubr.msk.bf16.mxu0 %vm2656_vm1, %v2655_v9 }
 0x22f   : > { %1071 = vst.msk [vmem:[#allocation2 + $0xc] sm:$0xf] %vm531_vm2, %v1069_v22  ;;  %2418 = vmatprep.subr.bf16.mxu0 %v2655_v9 }
 0x230   : > { %v2337_v26 = vpop.f32.mrf.mxu0  ;;  %v2377_v27 = vpop.f32.mrf.mxu1 }
 0x232   : > { %v881_v28 = vpop.f32.mrf.mxu0  ;;  %v1183_v29 = vpop.f32.mrf.mxu1 }
 0x233   : > { %v887_v30 = vmul.f32 0.35355338, %v881_v28  ;;  %v1189_v31 = vpack.c.bf16 %v1183_v29, %v1183_v29 }
 0x234   : > { %v2352_v32 = vpop.f32.mrf.mxu0  ;;  %v2392_v33 = vpop.f32.mrf.mxu1  ;;  %v1197_v34 = vld [vmem:[#allocation3 + $0x4] sm:$0xf] }
 0x235   : > { %v888_v35 = vpack.c.bf16 %v887_v30, %v887_v30  ;;  %1191 = vst.msk [vmem:[#allocation4 + $0xc] sm:$0xf] %vm531_vm2, %v1189_v31  ;;  %v1251_v36 = vsel %vm1200_vm3, %v1197_v34, 0 }
 0x236   : > { %v884_v37 = vpop.f32.mrf.mxu0  ;;  %v1186_v38 = vpop.f32.mrf.mxu1  ;;  %2401 = vmatpush3.bf16.xpose.msra.mxu1 %v1251_v36  ;;  %v1195_v58 = vld [vmem:[#allocation2 + $0xc] sm:$0xf] }
 0x237   : > { %890 = vst.msk [vmem:[#allocation2 + $0x8] sm:$0xf] %vm531_vm2, %v888_v35  ;;  %2412 = vmatprep.subr.bf16.mxu1 %v2655_v9 }
 0x238   : > { %v2353_v39 = vpop.f32.mrf.mxu0  ;;  %v2393_v40 = vpop.f32.mrf.mxu1 }
 0x23a   : > { %v1002_v41 = vpop.f32.mrf.mxu0 }
 0x23b   : > { %v1008_v42 = vpack.c.bf16 %v1002_v41, %v1002_v41 }
 0x23c   : > { %v2368_v43 = vpop.f32.mrf.mxu0 }
 0x23d   : > { %1010 = vst.msk [vmem:[#allocation4 + $0x8] sm:$0xf] %vm531_vm2, %v1008_v42  ;;  %2403 = vmatmul.mubr.msk.bf16.vlgmr.msra.gmra.mxu1 %vm1200_vm3, %v1193_v44 }
 0x23e   : > { %v1005_v46 = vpop.f32.mrf.mxu0  ;;  %v1194_v47 = vld [vmem:[#allocation2 + $0x8] sm:$0xf]  ;;  %2414 = vmatprep.mubr.msk.bf16.mxu1 %vm2656_vm1, %v2655_v9 }
 0x23f   : > { %2409 = vmatmul.mubr.msk.bf16.vlgmr.msra.gmra.mxu0 %vm1200_vm3, %v1194_v47 }
 0x240   : > { %2419 = vmatpush3.bf16.msra.mxu0 %v1442_v48  ;;  %v2369_v49 = vpop.f32.mrf.mxu0  ;;  %2420 = vmatprep.mubr.msk.bf16.mxu0 %vm2656_vm1, %v2655_v9 }
 0x241   : > { %2430 = vmatprep.subr.bf16.mxu0 %v2655_v9  ;;  %v1436_v49 = vld [vmem:[#allocation4 + $0xc] sm:$0xf] }
 0x242   : > { %v1123_v50 = vpop.f32.mrf.mxu0 }
 0x243   : > { %v1129_v51 = vpack.c.bf16 %v1123_v50, %v1123_v50 }
 0x244   : > { %v2384_v52 = vpop.f32.mrf.mxu0  ;;  %v1435_v42 = vld [vmem:[#allocation4 + $0x8] sm:$0xf] }
 0x245   : > { %1131 = vst.msk [vmem:[#allocation3 + $0xc] sm:$0xf] %vm531_vm2, %v1129_v51  ;;  %v1534_v45 = vsel %vm1440_vm4, %v1435_v42, 0  ;;  %v1580_v52 = vsel %vm1440_vm4, %v1436_v49, 0 }
 0x246   : > { %v1126_v53 = vpop.f32.mrf.mxu0 }
 0x248   : > { %v2385_v54 = vpop.f32.mrf.mxu0 }
 0x24c   : > { %v1199_v55 = vld [vmem:[#allocation3 + $0xc] sm:$0xf] }
 0x24d   : > { %v1343_v56 = vsel %vm1200_vm3, %v1199_v55, 0 }
 0x24e   : > { %2413 = vmatpush3.bf16.xpose.msra.mxu1 %v1343_v56 }
 0x24f   : > { %2424 = vmatprep.subr.bf16.mxu1 %v2655_v9 }
 0x255   : > { %2415 = vmatmul.mubr.msk.bf16.vlgmr.msra.gmra.mxu1 %vm1200_vm3, %v1195_v58  ;;  %v1623_v58 = vld [vmem:[%s3147_s4] sm:$0xf] }
 0x256   : > { %2425 = vmatpush3.bf16.msra.mxu1 %v1488_v59  ;;  %2426 = vmatprep.mubr.msk.bf16.mxu1 %vm2656_vm1, %v2655_v9  ;;  %v1677_v59 = vsel %vm1440_vm4, %v1623_v58, 0 }
 0x257   : > { %2436 = vmatprep.subr.bf16.mxu1 %v2655_v9 }
 0x2ed   : > { %v1241_v60 = vpop.f32.mrf.mxu0 }
 0x2ee   : > { %v1385_v61 = vsel %vm1200_vm3, %v1241_v60, -inf }
 0x2ef   : > { %1386 = vmax.xlane.f32.xlu1 %v1385_v61  ;;  %v2398_v62 = vpop.f32.mrf.mxu0 }
 0x2f0   : > { %v2205_v62 = vld [vmem:[%s3147_s4 + $0xc] sm:$0xf] }
 0x2f1   : > { %v1244_v63 = vpop.f32.mrf.mxu0 }
 0x2f3   : > { %v2399_v1 = vpop.f32.mrf.mxu0 }
 0x2fd   : > { %v1287_v2 = vpop.f32.mrf.mxu1 }
 0x2fe   : > { %v1388_v3 = vsel %vm1200_vm3, %v1287_v2, -inf }
 0x2ff   : > { %v2404_v4 = vpop.f32.mrf.mxu1  ;;  %1389 = vmax.xlane.f32.xlu1 %v1388_v3  ;;  %v1333_v5 = vpop.f32.mrf.mxu0 }
 0x300   : > { %v1391_v6 = vsel %vm1200_vm3, %v1333_v5, -inf }
 0x301   : > { %v1290_v7 = vpop.f32.mrf.mxu1  ;;  %1392 = vmax.xlane.f32.xlu0 %v1391_v6  ;;  %v2410_v8 = vpop.f32.mrf.mxu0  ;;  %v2203_v6 = vld [vmem:[%s3147_s4 + $0x8] sm:$0xf] }
 0x303   : > { %v2405_v10 = vpop.f32.mrf.mxu1  ;;  %v1336_v11 = vpop.f32.mrf.mxu0 }
 0x304   : > { %v1726_v10 = vsel %vm1440_vm4, %v2203_v6, 0  ;;  %v2563_v6 = vld [vmem:[%s3154_s11 + $0x28] sm:$0xff]  }
 0x305   : > { %v2411_v12 = vpop.f32.mrf.mxu0 }
 0x315   : > { %v1379_v13 = vpop.f32.mrf.mxu1 }
 0x316   : > { %v1394_v14 = vsel %vm1200_vm3, %v1379_v13, -inf }
 0x317   : > { %v2416_v15 = vpop.f32.mrf.mxu1  ;;  %1395 = vmax.xlane.f32.xlu1 %v1394_v14 }
 0x319   : > { %v1382_v16 = vpop.f32.mrf.mxu1 }
 0x31b   : > { %v2417_v17 = vpop.f32.mrf.mxu1 }
 0x378   : > { %v1387_v18 = vpop.xlane.xlu1 %1386 }
 0x379   : > { %v1397_v19 = vsub.f32 %v1241_v60, %v1387_v18  ;;  %v2200_v60 = vld [vmem:[%s3147_s4 + $0x4] sm:$0xf] }
 0x37a   : > { %v1631_v61 = vsel %vm1440_vm4, %v2200_v60, 0 }
 0x37b   : > { %v1401_v20 = vmul.f32 1.442695, %v1397_v19 }
 0x37d   : > { %2571 = vpow2.f32 %v1401_v20 }
 0x388   : > { %v1390_v21 = vpop.xlane.xlu1 %1389 }
 0x389   : > { %v1398_v22 = vsub.f32 %v1287_v2, %v1390_v21  ;;  %v1776_v2 = vsel %vm1440_vm4, %v2205_v62, 0 }
 0x38a   : > { %v2572_v23 = vpop.eup %2571  ;;  %v1393_v24 = vpop.xlane.xlu0 %1392 }
 0x38b   : > { %v1403_v25 = vmul.f32 1.442695, %v1398_v22  ;;  %v1399_v26 = vsub.f32 %v1333_v5, %v1393_v24  ;;  %v1409_v27 = vsel %vm1200_vm3, %v2572_v23, 0.0 }
 0x38c   : > { %1410 = vadd.xlane.f32.xlu0 %v1409_v27 }
 0x38d   : > { %2573 = vpow2.f32 %v1403_v25  ;;  %v1405_v28 = vmul.f32 1.442695, %v1399_v26 }
 0x38f   : > { %2575 = vpow2.f32 %v1405_v28 }
 0x39a   : > { %v2574_v29 = vpop.eup %2573 }
 0x39b   : > { %v1412_v30 = vsel %vm1200_vm3, %v2574_v29, 0.0 }
 0x39c   : > { %v2576_v31 = vpop.eup %2575  ;;  %1413 = vadd.xlane.f32.xlu1 %v1412_v30 }
 0x39d   : > { %v1415_v32 = vsel %vm1200_vm3, %v2576_v31, 0.0 }
 0x39e   : > { %1416 = vadd.xlane.f32.xlu0 %v1415_v32 }
 0x3a0   : > { %v1396_v33 = vpop.xlane.xlu1 %1395 }
 0x3a1   : > { %v1400_v34 = vsub.f32 %v1379_v13, %v1396_v33 }
 0x3a3   : > { %v1407_v35 = vmul.f32 1.442695, %v1400_v34 }
 0x3a5   : > { %2577 = vpow2.f32 %v1407_v35 }
 0x3b2   : > { %v2578_v36 = vpop.eup %2577 }
 0x3b3   : > { %v1418_v37 = vsel %vm1200_vm3, %v2578_v36, 0.0 }
 0x3b4   : > { %1419 = vadd.xlane.f32.xlu1 %v1418_v37 }
 0x415   : > { %v1411_v38 = vpop.xlane.xlu0 %1410 }
 0x416   : > { %2579 = vrcp.f32 %v1411_v38 }
 0x423   : > { %v2580_v39 = vpop.eup %2579 }
 0x424   : > { %v1425_v40 = vmul.f32 %v2580_v39, %v2572_v23 }
 0x425   : > { %v1414_v41 = vpop.xlane.xlu1 %1413 }
 0x426   : > { %2581 = vrcp.f32 %v1414_v41  ;;  %v1429_v43 = vpack.c.bf16 %v1425_v40, %v1425_v40 }
 0x427   : > { %v1417_v44 = vpop.xlane.xlu0 %1416 }
 0x428   : > { %2583 = vrcp.f32 %v1417_v44  ;;  %2421 = vmatmul.mubr.msk.bf16.vlgmr.msra.gmra.mxu0 %vm1200_vm3, %v1429_v43 }
 0x429   : > { %2431 = vmatpush3.bf16.msra.mxu0 %v1534_v45  ;;  %2432 = vmatprep.mubr.msk.bf16.mxu0 %vm2656_vm1, %v2655_v9 }
 0x42a   : > { %2442 = vmatprep.subr.bf16.mxu0 %v2655_v9 }
 0x433   : > { %v2582_v46 = vpop.eup %2581 }
 0x434   : > { %v1426_v47 = vmul.f32 %v2582_v46, %v2574_v29 }
 0x435   : > { %v2584_v48 = vpop.eup %2583 }
 0x436   : > { %v1430_v50 = vpack.c.bf16 %v1426_v47, %v1426_v47  ;;  %v1427_v51 = vmul.f32 %v2584_v48, %v2576_v31 }
 0x438   : > { %2427 = vmatmul.mubr.msk.bf16.vlgmr.msra.gmra.mxu1 %vm1200_vm3, %v1430_v50  ;;  %v1431_v53 = vpack.c.bf16 %v1427_v51, %v1427_v51  ;;  %v2559_v50 = vld [vmem:[%s3152_s9 + $0x8] sm:$0xff]  }
 0x439   : > { %2437 = vmatpush3.bf16.msra.mxu1 %v1580_v52  ;;  %2438 = vmatprep.mubr.msk.bf16.mxu1 %vm2656_vm1, %v2655_v9 }
 0x43a   : > { %2433 = vmatmul.mubr.msk.bf16.vlgmr.msra.gmra.mxu0 %vm1200_vm3, %v1431_v53  ;;  %2448 = vmatprep.subr.bf16.mxu1 %v2655_v9 }
 0x43b   : > { %2444 = vmatprep.mubr.msk.bf16.mxu0 %vm2656_vm1, %v2655_v9  ;;  %2443 = vmatpush3.bf16.msra.mxu0 %v1631_v61  ;;  %v2209_v61 = vld [vmem:[%s3153_s10] ss:$0 sm:$0xff] }
 0x43c   : > { %2454 = vmatprep.subr.bf16.mxu0 %v2655_v9 }
 0x43d   : > { %v1420_v54 = vpop.xlane.xlu1 %1419 }
 0x43e   : > { %2585 = vrcp.f32 %v1420_v54 }
 0x44b   : > { %v2586_v55 = vpop.eup %2585 }
 0x44c   : > { %v1428_v56 = vmul.f32 %v2586_v55, %v2578_v36  ;;  %v2207_v55 = vld [vmem:[%s3150_s7] ss:$0 sm:$0xff] }
 0x44e   : > { %v1432_v57 = vpack.c.bf16 %v1428_v56, %v1428_v56 }
 0x450   : > { %2439 = vmatmul.mubr.msk.bf16.vlgmr.msra.gmra.mxu1 %vm1200_vm3, %v1432_v57  ;;  %v2208_v57 = vld [vmem:[%s3151_s8] ss:$0 sm:$0xff] }
 0x451   : > { %2450 = vmatprep.mubr.msk.bf16.mxu1 %vm2656_vm1, %v2655_v9  ;;  %2449 = vmatpush3.bf16.msra.mxu1 %v1677_v59 }
 0x452   : > { %2460 = vmatprep.subr.bf16.mxu1 %v2655_v9 }
 0x4e8   : > { %v1478_v63 = vpop.f32.mrf.mxu0 }
 0x4e9   : > { %v1622_v1 = vpack.c.bf16 %v1478_v63, %v1478_v63 }
 0x4ea   : > { %v2422_v3 = vpop.f32.mrf.mxu0 }
 0x4eb   : > { %2451 = vmatmul.mubr.msk.bf16.vlgmr.msra.gmra.mxu1 %vm1200_vm3, %v1622_v1 }
 0x4ec   : > { %v1481_v4 = vpop.f32.mrf.mxu0  ;;  %2461 = vmatpush3.bf16.msra.mxu1 %v1776_v2  ;;  %2462 = vmatprep.mubr.msk.bf16.mxu1 %vm2656_vm1, %v2655_v9 }
 0x4ed   : > { %2474 = vmatprep.subr.bf16.mxu1 %v2655_v9  ;;  %v2561_v4 = vld [vmem:[%s3154_s11 + $0x38] sm:$0xff]  }
 0x4ee   : > { %v2423_v5 = vpop.f32.mrf.mxu0 }
 0x4ef   : > { %v2562_v5 = vld [vmem:[%s3154_s11 + $0x30] sm:$0xff]  }
 0x4f8   : > { %v1524_v7 = vpop.f32.mrf.mxu1 }
 0x4f9   : > { %v1624_v8 = vpack.c.bf16 %v1524_v7, %v1524_v7  ;;  %v2564_v7 = vld [vmem:[%s3154_s11 + $0x20] sm:$0xff]  }
 0x4fa   : > { %v2428_v11 = vpop.f32.mrf.mxu1  ;;  %v1570_v12 = vpop.f32.mrf.mxu0 }
 0x4fb   : > { %2445 = vmatmul.mubr.msk.bf16.vlgmr.msra.gmra.mxu0 %vm1200_vm3, %v1624_v8  ;;  %v1719_v18 = vpack.c.bf16 %v1570_v12, %v1570_v12 }
 0x4fc   : > { %v1527_v13 = vpop.f32.mrf.mxu1  ;;  %v2434_v14 = vpop.f32.mrf.mxu0  ;;  %2455 = vmatpush3.bf16.msra.mxu0 %v1726_v10  ;;  %2456 = vmatprep.mubr.msk.bf16.mxu0 %vm2656_vm1, %v2655_v9 }
 0x4fd   : > { %2466 = vmatprep.subr.bf16.mxu0 %v2655_v9  ;;  %v2565_v13 = vld [vmem:[%s3154_s11 + $0x18] sm:$0xff]   ;;  %v2566_v14 = vld [vmem:[%s3154_s11 + $0x10] sm:$0xff]  }
 0x4fe   : > { %v2429_v15 = vpop.f32.mrf.mxu1  ;;  %v1573_v16 = vpop.f32.mrf.mxu0 }
 0x4ff   : > { %v2567_v15 = vld [vmem:[%s3154_s11 + $0x8] sm:$0xff]   ;;  %v2568_v16 = vld [vmem:[%s3154_s11] sm:$0xff]  }
 0x500   : > { %v2435_v17 = vpop.f32.mrf.mxu0 }
 0x503   : > { %2457 = vmatmul.mubr.msk.bf16.vlgmr.msra.gmra.mxu0 %vm1200_vm3, %v1719_v18 }
 0x504   : > { %2470 = vmatprep.mubr.msk.bf16.mxu0 %vm2656_vm1, %v2655_v9  ;;  %2467 = vmatpush3.bf16.msra.mxu0 %v2559_v50 }
 0x505   : > { %2468 = vmatprep.subr.bf16.mxu0 %v2655_v9 }
 0x510   : > { %v1616_v19 = vpop.f32.mrf.mxu1 }
 0x511   : > { %v1769_v20 = vpack.c.bf16 %v1616_v19, %v1616_v19 }
 0x512   : > { %v2440_v21 = vpop.f32.mrf.mxu1 }
 0x513   : > { %2463 = vmatmul.mubr.msk.bf16.vlgmr.msra.gmra.mxu1 %vm1200_vm3, %v1769_v20  ;;  %v2213_v21 = vld [vmem:[%s3155_s12] ss:$0 sm:$0xff] }
 0x514   : > { %v1619_v22 = vpop.f32.mrf.mxu1  ;;  %2490 = vmatprep.mubr.msk.bf16.mxu1 %vm2656_vm1, %v2655_v9  ;;  %2475 = vmatpush3.bf16.msra.mxu1 %v2561_v4 }
 0x515   : > { %2476 = vmatprep.subr.bf16.mxu1 %v2655_v9 }
 0x516   : > { %v2441_v23 = vpop.f32.mrf.mxu1 }
 0x518   : > { %2477 = vmatpush3.bf16.msra.mxu1 %v2562_v5 }
 0x519   : > { %2478 = vmatprep.subr.bf16.mxu1 %v2655_v9 }
 0x51c   : > { %2479 = vmatpush3.bf16.msra.mxu1 %v2563_v6 }
 0x51d   : > { %2480 = vmatprep.subr.bf16.mxu1 %v2655_v9 }
 0x520   : > { %2481 = vmatpush3.bf16.msra.mxu1 %v2564_v7 }
 0x521   : > { %2482 = vmatprep.subr.bf16.mxu1 %v2655_v9 }
 0x524   : > { %2483 = vmatpush3.bf16.msra.mxu1 %v2565_v13 }
 0x525   : > { %2484 = vmatprep.subr.bf16.mxu1 %v2655_v9 }
 0x528   : > { %2485 = vmatpush3.bf16.msra.mxu1 %v2566_v14 }
 0x529   : > { %2486 = vmatprep.subr.bf16.mxu1 %v2655_v9 }
 0x52c   : > { %2487 = vmatpush3.bf16.msra.mxu1 %v2567_v15 }
 0x52d   : > { %2488 = vmatprep.subr.bf16.mxu1 %v2655_v9 }
 0x530   : > { %2489 = vmatpush3.bf16.msra.mxu1 %v2568_v16 }
 0x5ab   : > { %v1713_v24 = vpop.f32.mrf.mxu1 }
 0x5ad   : > { %v2452_v25 = vpop.f32.mrf.mxu1 }
 0x5af   : > { %v1716_v26 = vpop.f32.mrf.mxu1 }
 0x5b1   : > { %v2453_v27 = vpop.f32.mrf.mxu1 }
 0x5bb   : > { %v1667_v28 = vpop.f32.mrf.mxu0 }
 0x5bc   : > { %v1714_v36 = vadd.f32 %v1713_v24, %v1667_v28 }
 0x5bd   : > { %v2446_v29 = vpop.f32.mrf.mxu0 }
 0x5bf   : > { %v1670_v30 = vpop.f32.mrf.mxu0 }
 0x5c1   : > { %v2447_v31 = vpop.f32.mrf.mxu0 }
 0x5c3   : > { %v1762_v32 = vpop.f32.mrf.mxu0 }
 0x5c4   : > { %v1768_v37 = vadd.f32 %v1762_v32, %v1714_v36 }
 0x5c5   : > { %v2458_v33 = vpop.f32.mrf.mxu0 }
 0x5c7   : > { %v1765_v34 = vpop.f32.mrf.mxu0 }
 0x5c9   : > { %v2459_v35 = vpop.f32.mrf.mxu0 }
 0x5d3   : > { %v1812_v38 = vpop.f32.mrf.mxu1 }
 0x5d4   : > { %v1818_v39 = vadd.f32 %v1812_v38, %v1768_v37 }
 0x5d5   : > { %v2464_v40 = vpop.f32.mrf.mxu1 }
 0x5d6   : > { %v3038_v41 = vadd.f32 %v1818_v39, %v2781_v0  ;;  %v2560_v0 = vld [vmem:[%s3152_s9] sm:$0xff]  }
 0x5d7   : > { %v1815_v42 = vpop.f32.mrf.mxu1  ;;  %2469 = vmatpush3.bf16.msra.mxu0 %v2560_v0 }
 0x5d8   : > { %v1822_v43 = vsel %vm440_vm0, %v3038_v41, 0.0 }
 0x5d9   : > { %v2465_v44 = vpop.f32.mrf.mxu1  ;;  %1823 = vadd.xlane.f32.xlu0 %v1822_v43 }
 0x662   : > { %v1824_v45 = vpop.xlane.xlu0 %1823 }
 0x663   : > { %v1825_v46 = vmul.f32 0.03125, %v1824_v45 }
 0x665   : > { %v1826_v47 = vsub.f32 %v3038_v41, %v1825_v46 }
 0x667   : > { %v1827_v48 = vmul.f32 %v1826_v47, %v1826_v47 }
 0x669   : > { %v1828_v49 = vsel %vm440_vm0, %v1827_v48, 0.0 }
 0x66a   : > { %1829 = vadd.xlane.f32.xlu1 %v1828_v49 }
 0x6f3   : > { %v1830_v51 = vpop.xlane.xlu1 %1829 }
 0x6f4   : > { %v1831_v52 = vmul.f32 0.03125, %v1830_v51 }
 0x6f6   : > { %v1832_v53 = vadd.f32 1e-05, %v1831_v52 }
 0x6f8   : > { %2587 = vrsqrt.f32 %v1832_v53 }
 0x705   : > { %v2588_v54 = vpop.eup %2587 }
 0x706   : > { %v1834_v56 = vmul.f32 %v2588_v54, %v1826_v47 }
 0x708   : > { %v1841_v58 = vmul.f32 %v2207_v55, %v1834_v56 }
 0x70a   : > { %v1848_v59 = vadd.f32 %v2208_v57, %v1841_v58 }
 0x70c   : > { %v1849_v60 = vpack.c.bf16 %v1848_v59, %v1848_v59 }
 0x70e   : > { %2471 = vmatmul.mubr.msk.bf16.vlgmr.msra.gmra.mxu0 %vm440_vm0, %v1849_v60 }
 0x7ce   : > { %v1910_v62 = vpop.f32.mrf.mxu0 }
 0x7cf   : > { %v1911_v63 = vadd.f32 %v2209_v61, %v1910_v62 }
 0x7d0   : > { %v2472_v1 = vpop.f32.mrf.mxu0 }
 0x7d1   : > { %1916 = vmax.xlane.f32.xlu0 %v1911_v63 }
 0x7d2   : > { %v1913_v2 = vpop.f32.mrf.mxu0 }
 0x7d4   : > { %v2473_v3 = vpop.f32.mrf.mxu0 }
 0x85a   : > { %v1917_v8 = vpop.xlane.xlu0 %1916 }
 0x85b   : > { %v1918_v10 = vsub.f32 %v1911_v63, %v1917_v8 }
 0x85d   : > { %v1919_v11 = vmul.f32 1.442695, %v1918_v10 }
 0x85f   : > { %2589 = vpow2.f32 %v1919_v11 }
 0x86c   : > { %v2590_v12 = vpop.eup %2589 }
 0x86d   : > { %1921 = vadd.xlane.f32.xlu1 %v2590_v12 }
 0x8f6   : > { %v1922_v17 = vpop.xlane.xlu1 %1921 }
 0x8f7   : > { %2591 = vrcp.f32 %v1922_v17 }
 0x904   : > { %v2592_v18 = vpop.eup %2591 }
 0x905   : > { %v1924_v19 = vmul.f32 %v2592_v18, %v2590_v12 }
 0x907   : > { %v1925_v20 = vpack.c.bf16 %v1924_v19, %v1924_v19 }
 0x909   : > { %2491 = vmatmul.mubr.bf16.vlgmr.msra.gmra.mxu1 %v1925_v20 }
 0x9c9   : > { %v2031_v22 = vpop.f32.mrf.mxu1 }
 0x9ca   : > { %v2032_v23 = vadd.f32 %v2213_v21, %v2031_v22 }
 0x9cb   : > { %v2492_v9 = vpop.f32.mrf.mxu1 }
 0x9cc   : > { %v2037_v24 = vadd.f32 %v2032_v23, %v3038_v41 }
 0x9cd   : > { %v2034_v25 = vpop.f32.mrf.mxu1 }
 0x9ce   : > { %2038 = vst.msk [vmem:[%s431_s20] sm:$0xff] %vm440_vm0, %v2037_v24 }
 0x9cf   : > { %v2493_v26 = vpop.f32.mrf.mxu1 }
 0x9d0   : > { %2606 = shalt.err (!%p2603_p3)
}
 0x9d1   : > { %s2607_s16 = scalar_lea.hbm %s3101_s1, 128  ;;  %s2611_s22 = scalar_lea.hbm %s3156_s13, 256 }
 0x9d2   : > { %p2608_p4 = scmp.ne.s32.totalorder %s3101_s1, %s2607_s16  ;;  %p2612_p9 = scmp.lt.s32.totalorder %s3101_s1, %s3156_s13 }
 0x9d3   : > { %p2613_p10 = scmp.lt.s32.totalorder %s2611_s22, %s2607_s16 }
 0x9d4   : > { %p2609_p7 = pnand %p2608_p4, %p2766_p5 }
 0x9d5   : > { %p2614_p11 = por %p2613_p10, %p2612_p9 }
 0x9d6   : > { %p2610_p8 = pneg %p2609_p7 }
 0x9d8   : > { %p2615_p12 = pnand %p2614_p11, %p2610_p8 }
 0x9da   : > { %2618 = shalt.err (!%p2615_p12)
}
 0x9db   : > { %2494 = dma.vmem_to_hbm [thread:$0]  (%p2766_p5), %s3103_s21, 128, %s3101_s1, %s2040_s29  }
 0x9dc PF: > { %p2500_p13 = scmp.ge.s32.totalorder %s2653_s28, 2  ;;  %s2065_s24 = sand.u32 1, %s2641_s25  }
 0x9dd   : > { %s2066_s2 = scalar_lea.sflag [#allocation6], %s2065_s24 }
 0x9de   : > { %p2497_p0 = pnand %p2500_p13, %p2770_p6 }
 0x9e0   : > { %p2498_p1 = pneg %p2497_p0 }
 0x9e2   : > { %2636 = dma.done.wait (%p2498_p1), %s2066_s2, 128  }
 0x9e3   : > { %2638 = vsyncadd (%p2498_p1), %s2066_s2, 4294967168  ;;  %p23_p2 = scmp.ge.s32.totalorder %s2753_s14, 4   ;;  %s3165_s25 = smov %s2645_s26 }
 0x9e4   : > { %s3166_s26 = smov %s2649_s27  ;;  %s3167_s27 = smov %s2764_s17 }
 0x9e5   : > { %s3168_s28 = smov %s2753_s14  ;;  %25 = sbr.rel (!%p23_p2) target bundleno = 7 (0x7), region = 128 }
 0x9ea   :  { %2071 = vsyncpa [#allocation6], 1 }
 0x9eb   :  { %2073 = vsyncpa [#allocation6 + $0x1], 1 }

</bundles_post_ra>
